<compile_context>
chip_gen: v5e
topology: v5e:2x2
jax: 0.10.0
libtpu: 0.0.40
codegen_flags: <defaults>
</compile_context>

<pallas_src>
import functools

import jax
import jax.numpy as jnp
from jax import lax
from jax.experimental import pallas as pl
from jax.experimental.pallas import tpu as pltpu

EPS = 1e-5
LANE = 128
VMEM_LIMIT = 32 * 1024 * 1024   # explicit scoped-VMEM request (safe on v5e/v6e/v7x)


# ----------------------------- Pallas kernels ------------------------------

def _conv1_ds_stats_kernel(p_ref, w1_ref, wd_ref, y1_ref, r_ref, st_ref):
    # conv1 GEMM + downsample GEMM on one row tile; emit per-tile BN partials.
    p = p_ref[...]                                              # (TM, K1p) bf16
    y1 = jnp.dot(p, w1_ref[...], preferred_element_type=jnp.float32)
    r = jnp.dot(p, wd_ref[...], preferred_element_type=jnp.float32)
    y1_ref[...] = y1
    r_ref[...] = r
    st_ref[...] = jnp.concatenate(
        [jnp.sum(y1, axis=0, keepdims=True),
         jnp.sum(y1 * y1, axis=0, keepdims=True),
         jnp.sum(r, axis=0, keepdims=True),
         jnp.sum(r * r, axis=0, keepdims=True),
         jnp.zeros((4, y1.shape[1]), jnp.float32)], axis=0)


def _conv2_stats_kernel(p_ref, w_ref, y_ref, st_ref):
    # conv2 GEMM on one row tile; emit per-tile BN partials.
    y = jnp.dot(p_ref[...], w_ref[...], preferred_element_type=jnp.float32)
    y_ref[...] = y
    st_ref[...] = jnp.concatenate(
        [jnp.sum(y, axis=0, keepdims=True),
         jnp.sum(y * y, axis=0, keepdims=True),
         jnp.zeros((6, y.shape[1]), jnp.float32)], axis=0)


def _bn_relu_kernel(x_ref, sc_ref, sh_ref, o_ref):
    # folded BN (per-channel scale/shift) + ReLU on one row tile; f32 math.
    o_ref[...] = jnp.maximum(x_ref[...] * sc_ref[...] + sh_ref[...],
                             0.0).astype(o_ref.dtype)


def _bn_add_relu_kernel(y_ref, r_ref, sc2_ref, sh2_ref, scd_ref, shd_ref,
                        o_ref):
    # bn2(conv2) + bn_d(downsample) + residual add + final ReLU, one row tile.
    out = y_ref[...] * sc2_ref[...] + sh2_ref[...]
    res = r_ref[...] * scd_ref[...] + shd_ref[...]
    o_ref[...] = jnp.maximum(out + res, 0.0)


# ------------------------------ pallas_call glue ----------------------------

def _tiled_call(kernel, inputs, *, in_specs, out_shape, out_specs, grid):
    return pl.pallas_call(
        kernel,
        out_shape=out_shape,
        grid_spec=pltpu.PrefetchScalarGridSpec(
            num_scalar_prefetch=0, grid=grid,
            in_specs=in_specs, out_specs=out_specs),
        compiler_params=pltpu.CompilerParams(
            dimension_semantics=("parallel",),
            vmem_limit_bytes=VMEM_LIMIT),
    )(*inputs)


def _round_up(x, m):
    return ((x + m - 1) // m) * m


def _pad2d(a, rows, cols):
    return jnp.pad(a, ((0, rows - a.shape[0]), (0, cols - a.shape[1])))


def _im2col(x_nhwc, kh, kw):
    # 'same' padding, stride 1:  (N, H, W, C) -> (N*H*W, kh*kw*C)
    # TODO(synk): for large shapes, replace JAX-side im2col (9x patch traffic)
    # with in-kernel halo DMA / shifted GEMMs to cut HBM reads.
    N, H, W, C = x_nhwc.shape
    ph, pw = (kh - 1) // 2, (kw - 1) // 2
    xp = jnp.pad(x_nhwc, ((0, 0), (ph, ph), (pw, pw), (0, 0)))
    cols = [xp[:, i:i + H, j:j + W, :] for i in range(kh) for j in range(kw)]
    return jnp.concatenate(cols, axis=-1).reshape(N * H * W, kh * kw * C)


def _fold_bn(s, sq, gamma_p, beta_p, count):
    # training-mode (biased) batch stats folded into per-channel scale/shift.
    mean = s / count
    var = sq / count - mean * mean
    scale = gamma_p * lax.rsqrt(var[None, :] + EPS)
    shift = beta_p - mean[None, :] * scale
    return scale, shift


@functools.partial(jax.jit, static_argnames=("block_rows",))
def resblock_forward(x_nchw, params, block_rows=128):
    # block_rows: row-tile size.  128 suits the toy problem; use 512-1024 on
    # v5e/v6e and 256-512 on v7x (64 MiB VMEM) for realistic ResNet shapes.
    N, Cin, H, W = x_nchw.shape
    Cout = params["w1"].shape[-1]
    R = N * H * W
    Cp = _round_up(Cout, LANE)
    K1, K2 = 9 * Cin, 9 * Cout
    K1p, K2p = _round_up(K1, LANE), _round_up(K2, LANE)
    TM = min(block_rows, _round_up(R, 8))
    Rp = _round_up(R, TM)
    nR = Rp // TM

    x = jnp.transpose(x_nchw, (0, 2, 3, 1)).astype(jnp.float32)   # -> NHWC

    row_spec = pl.BlockSpec((TM, Cp), lambda i: (i, 0))
    stat_spec = pl.BlockSpec((8, Cp), lambda i: (i, 0))
    vec_spec = pl.BlockSpec((1, Cp), lambda i: (0, 0))

    # ---- pass 1: conv1 GEMM + downsample GEMM + partial BN stats ----------
    p1 = _pad2d(_im2col(x, 3, 3), Rp, K1p).astype(jnp.bfloat16)
    w1p = _pad2d(params["w1"].reshape(K1, Cout), K1p, Cp).astype(jnp.bfloat16)
    # 1x1 downsample weight embedded at the centre-tap rows of the conv1
    # patch layout so it reuses the same streamed patch tile.
    wd_emb = jnp.zeros((K1p, Cp), jnp.float32)
    wd_emb = wd_emb.at[4 * Cin:5 * Cin, :Cout].set(params["wd"])
    wd_emb = wd_emb.astype(jnp.bfloat16)
    # NOTE: conv biases b1/b2/bd are omitted on purpose -- a bias added before
    # training-mode BatchNorm is exactly cancelled by the mean subtraction.

    y1_raw, r_raw, st1 = _tiled_call(
        _conv1_ds_stats_kernel, [p1, w1p, wd_emb],
        in_specs=[pl.BlockSpec((TM, K1p), lambda i: (i, 0)),
                  pl.BlockSpec((K1p, Cp), lambda i: (0, 0)),
                  pl.BlockSpec((K1p, Cp), lambda i: (0, 0))],
        out_shape=(jax.ShapeDtypeStruct((Rp, Cp), jnp.float32),
                   jax.ShapeDtypeStruct((Rp, Cp), jnp.float32),
                   jax.ShapeDtypeStruct((nR * 8, Cp), jnp.float32)),
        out_specs=(row_spec, row_spec, stat_spec),
        grid=(nR,))

    st1 = st1.reshape(nR, 8, Cp).sum(axis=0)
    g1p, be1p = _pad2d(params["g1"], 1, Cp), _pad2d(params["be1"], 1, Cp)
    gdp, bedp = _pad2d(params["gd"], 1, Cp), _pad2d(params["bed"], 1, Cp)
    scale1, shift1 = _fold_bn(st1[0], st1[1], g1p, be1p, R)
    scaled, shiftd = _fold_bn(st1[2], st1[3], gdp, bedp, R)

    # ---- pass 2: bn1 + relu (per tile, f32 math, bf16 store) --------------
    y1 = _tiled_call(
        _bn_relu_kernel, [y1_raw, scale1, shift1],
        in_specs=[row_spec, vec_spec, vec_spec],
        out_shape=jax.ShapeDtypeStruct((Rp, Cp), jnp.bfloat16),
        out_specs=row_spec,
        grid=(nR,))

    # ---- pass 3: conv2 GEMM + partial BN stats -----------------------------
    y1_act = y1[:R, :Cout].reshape(N, H, W, Cout)                 # bf16
    p2 = _pad2d(_im2col(y1_act, 3, 3), Rp, K2p)                   # bf16
    w2p = _pad2d(params["w2"].reshape(K2, Cout), K2p, Cp).astype(jnp.bfloat16)

    y2_raw, st2 = _tiled_call(
        _conv2_stats_kernel, [p2, w2p],
        in_specs=[pl.BlockSpec((TM, K2p), lambda i: (i, 0)),
                  pl.BlockSpec((K2p, Cp), lambda i: (0, 0))],
        out_shape=(jax.ShapeDtypeStruct((Rp, Cp), jnp.float32),
                   jax.ShapeDtypeStruct((nR * 8, Cp), jnp.float32)),
        out_specs=(row_spec, stat_spec),
        grid=(nR,))

    st2 = st2.reshape(nR, 8, Cp).sum(axis=0)
    g2p, be2p = _pad2d(params["g2"], 1, Cp), _pad2d(params["be2"], 1, Cp)
    scale2, shift2 = _fold_bn(st2[0], st2[1], g2p, be2p, R)

    # ---- pass 4: bn2 + bn_d(residual) + add + relu (fused, one write) ------
    out = _tiled_call(
        _bn_add_relu_kernel,
        [y2_raw, r_raw, scale2, shift2, scaled, shiftd],
        in_specs=[row_spec, row_spec, vec_spec, vec_spec, vec_spec, vec_spec],
        out_shape=jax.ShapeDtypeStruct((Rp, Cp), jnp.float32),
        out_specs=row_spec,
        grid=(nR,))

    out = out[:R, :Cout].reshape(N, H, W, Cout)
    return jnp.transpose(out, (0, 3, 1, 2))                       # -> NCHW


# ----------------------------- pure-JAX reference ---------------------------

HIGH = lax.Precision.HIGHEST


def _conv2d_same_ref(x_nhwc, w_hwio, b):
    y = lax.conv_general_dilated(
        x_nhwc, w_hwio, window_strides=(1, 1), padding="SAME",
        dimension_numbers=("NHWC", "HWIO", "NHWC"), precision=HIGH)
    return y + b.reshape(1, 1, 1, -1)


def _bn_ref(x_nhwc, g, b):
    mean = jnp.mean(x_nhwc, axis=(0, 1, 2), keepdims=True)
    var = jnp.mean((x_nhwc - mean) ** 2, axis=(0, 1, 2), keepdims=True)
    return ((x_nhwc - mean) / jnp.sqrt(var + EPS)
            * g.reshape(1, 1, 1, -1) + b.reshape(1, 1, 1, -1))


def resblock_reference(x_nchw, params):
    x = jnp.transpose(x_nchw, (0, 2, 3, 1)).astype(jnp.float32)
    out = _conv2d_same_ref(x, params["w1"], params["b1"])
    out = jax.nn.relu(_bn_ref(out, params["g1"], params["be1"]))
    out = _conv2d_same_ref(out, params["w2"], params["b2"])
    out = _bn_ref(out, params["g2"], params["be2"])
    cin, cout = params["wd"].shape
    res = _conv2d_same_ref(x, params["wd"].reshape(1, 1, cin, cout),
                           params["bd"])
    res = _bn_ref(res, params["gd"], params["bed"])
    out = jax.nn.relu(out + res)
    return jnp.transpose(out, (0, 3, 1, 2))


# ---------------------------------- main ------------------------------------

if __name__ == "__main__":
    N, Cin, Cout, H, W = 2, 4, 8, 16, 16
    key = jax.random.PRNGKey(0)
    keys = jax.random.split(key, 14)

    x = jax.random.normal(keys[0], (N, Cin, H, W), jnp.float32)

    params = dict(
        w1=0.2 * jax.random.normal(keys[1], (3, 3, Cin, Cout), jnp.float32),
        b1=0.1 * jax.random.normal(keys[2], (1, Cout), jnp.float32),
        g1=1.0 + 0.1 * jax.random.normal(keys[3], (1, Cout), jnp.float32),
        be1=0.1 * jax.random.normal(keys[4], (1, Cout), jnp.float32),
        w2=0.2 * jax.random.normal(keys[5], (3, 3, Cout, Cout), jnp.float32),
        b2=0.1 * jax.random.normal(keys[6], (1, Cout), jnp.float32),
        g2=1.0 + 0.1 * jax.random.normal(keys[7], (1, Cout), jnp.float32),
        be2=0.1 * jax.random.normal(keys[8], (1, Cout), jnp.float32),
        wd=0.2 * jax.random.normal(keys[9], (Cin, Cout), jnp.float32),
        bd=0.1 * jax.random.normal(keys[10], (1, Cout), jnp.float32),
        gd=1.0 + 0.1 * jax.random.normal(keys[11], (1, Cout), jnp.float32),
        bed=0.1 * jax.random.normal(keys[12], (1, Cout), jnp.float32),
    )

    out = jax.block_until_ready(resblock_forward(x, params))
    ref = jax.block_until_ready(resblock_reference(x, params))

    assert out.shape == (N, Cout, H, W), out.shape
    # Kernel uses bf16 MXU operands with f32 accumulation; reference is f32
    # HIGHEST, so allow bf16-level tolerance.
    max_err = float(jnp.max(jnp.abs(out - ref)))
    assert max_err < 5e-2, f"kernel/reference mismatch, max abs err={max_err}"
    print("KERNEL_OK")
</pallas_src>

<mosaic_0001>
module attributes {stable_mosaic.version = 11 : i64} {
  func.func @_conv1_ds_stats_kernel(%arg0: i32, %arg1: memref<128x128xbf16, #tpu.memory_space<vmem>>, %arg2: memref<128x128xbf16, #tpu.memory_space<vmem>>, %arg3: memref<128x128xbf16, #tpu.memory_space<vmem>>, %arg4: memref<128x128xf32, #tpu.memory_space<vmem>>, %arg5: memref<128x128xf32, #tpu.memory_space<vmem>>, %arg6: memref<8x128xf32, #tpu.memory_space<vmem>>) attributes {dimension_semantics = [#tpu.dimension_semantics<parallel>], iteration_bounds = array<i64: 4>, scalar_prefetch = 0 : i64, scratch_operands = 0 : i64, tpu.core_type = #tpu.core_type<tc>, window_params = [{transform_indices = @transform_0, window_bounds = array<i64: 128, 128>}, {pipeline_mode = #tpu.pipeline_mode<synchronous>, transform_indices = @transform_1, window_bounds = array<i64: 128, 128>}, {pipeline_mode = #tpu.pipeline_mode<synchronous>, transform_indices = @transform_2, window_bounds = array<i64: 128, 128>}, {transform_indices = @transform_3, window_bounds = array<i64: 128, 128>}, {transform_indices = @transform_4, window_bounds = array<i64: 128, 128>}, {transform_indices = @transform_5, window_bounds = array<i64: 8, 128>}]} {
    %c0 = arith.constant 0 : index
    %c0_0 = arith.constant 0 : index
    %0 = vector.load %arg1[%c0, %c0_0] : memref<128x128xbf16, #tpu.memory_space<vmem>>, vector<128x128xbf16>
    %c0_1 = arith.constant 0 : index
    %c0_2 = arith.constant 0 : index
    %1 = vector.load %arg2[%c0_1, %c0_2] : memref<128x128xbf16, #tpu.memory_space<vmem>>, vector<128x128xbf16>
    %cst = arith.constant dense<0.000000e+00> : vector<128x128xf32>
    %2 = tpu.matmul %0, %1, %cst {dimension_numbers = #tpu.dot_dimension_numbers<[1], [0], [0], [1], [0, 0, 1, 1], [], []>} : vector<128x128xbf16>, vector<128x128xbf16>, vector<128x128xf32> -> vector<128x128xf32>
    %c0_3 = arith.constant 0 : index
    %c0_4 = arith.constant 0 : index
    %3 = vector.load %arg3[%c0_3, %c0_4] : memref<128x128xbf16, #tpu.memory_space<vmem>>, vector<128x128xbf16>
    %cst_5 = arith.constant dense<0.000000e+00> : vector<128x128xf32>
    %4 = tpu.matmul %0, %3, %cst_5 {dimension_numbers = #tpu.dot_dimension_numbers<[1], [0], [0], [1], [0, 0, 1, 1], [], []>} : vector<128x128xbf16>, vector<128x128xbf16>, vector<128x128xf32> -> vector<128x128xf32>
    %c0_6 = arith.constant 0 : index
    %c0_7 = arith.constant 0 : index
    %5 = vector.load %arg4[%c0_6, %c0_7] : memref<128x128xf32, #tpu.memory_space<vmem>>, vector<128x128xf32>
    tpu.vector_store %arg4[%c0_6, %c0_7], %2 {strides = array<i32>} : memref<128x128xf32, #tpu.memory_space<vmem>>, vector<128x128xf32>,
    %c0_8 = arith.constant 0 : index
    %c0_9 = arith.constant 0 : index
    %6 = vector.load %arg5[%c0_8, %c0_9] : memref<128x128xf32, #tpu.memory_space<vmem>>, vector<128x128xf32>
    tpu.vector_store %arg5[%c0_8, %c0_9], %4 {strides = array<i32>} : memref<128x128xf32, #tpu.memory_space<vmem>>, vector<128x128xf32>,
    %cst_10 = arith.constant dense<0.000000e+00> : vector<128xf32>
    %7 = vector.multi_reduction <add>, %2, %cst_10 [0] : vector<128x128xf32> to vector<128xf32>
    %8 = vector.shape_cast %7 : vector<128xf32> to vector<1x128xf32>
    %9 = arith.mulf %2, %2 : vector<128x128xf32>
    %cst_11 = arith.constant dense<0.000000e+00> : vector<128xf32>
    %10 = vector.multi_reduction <add>, %9, %cst_11 [0] : vector<128x128xf32> to vector<128xf32>
    %11 = vector.shape_cast %10 : vector<128xf32> to vector<1x128xf32>
    %cst_12 = arith.constant dense<0.000000e+00> : vector<128xf32>
    %12 = vector.multi_reduction <add>, %4, %cst_12 [0] : vector<128x128xf32> to vector<128xf32>
    %13 = vector.shape_cast %12 : vector<128xf32> to vector<1x128xf32>
    %14 = arith.mulf %4, %4 : vector<128x128xf32>
    %cst_13 = arith.constant dense<0.000000e+00> : vector<128xf32>
    %15 = vector.multi_reduction <add>, %14, %cst_13 [0] : vector<128x128xf32> to vector<128xf32>
    %16 = vector.shape_cast %15 : vector<128xf32> to vector<1x128xf32>
    %cst_14 = arith.constant 0.000000e+00 : f32
    %17 = vector.broadcast %cst_14 : f32 to vector<4x128xf32>
    %18 = tpu.concatenate %8, %11, %13, %16, %17 in 0 : vector<1x128xf32>, vector<1x128xf32>, vector<1x128xf32>, vector<1x128xf32>, vector<4x128xf32> -> vector<8x128xf32>
    %c0_15 = arith.constant 0 : index
    %c0_16 = arith.constant 0 : index
    %19 = vector.load %arg6[%c0_15, %c0_16] : memref<8x128xf32, #tpu.memory_space<vmem>>, vector<8x128xf32>
    tpu.vector_store %arg6[%c0_15, %c0_16], %18 {strides = array<i32>} : memref<8x128xf32, #tpu.memory_space<vmem>>, vector<8x128xf32>,
    return
  }
  func.func @transform_0(%arg0: i32) -> (i32, i32) {
    %c0_i32 = arith.constant 0 : i32
    %c0_i32_0 = arith.constant 0 : i32
    return %arg0, %c0_i32 : i32, i32
  }
  func.func @transform_1(%arg0: i32) -> (i32, i32) {
    %c0_i32 = arith.constant 0 : i32
    %c0_i32_0 = arith.constant 0 : i32
    %c0_i32_1 = arith.constant 0 : i32
    return %c0_i32, %c0_i32_0 : i32, i32
  }
  func.func @transform_2(%arg0: i32) -> (i32, i32) {
    %c0_i32 = arith.constant 0 : i32
    %c0_i32_0 = arith.constant 0 : i32
    %c0_i32_1 = arith.constant 0 : i32
    return %c0_i32, %c0_i32_0 : i32, i32
  }
  func.func @transform_3(%arg0: i32) -> (i32, i32) {
    %c0_i32 = arith.constant 0 : i32
    %c0_i32_0 = arith.constant 0 : i32
    return %arg0, %c0_i32 : i32, i32
  }
  func.func @transform_4(%arg0: i32) -> (i32, i32) {
    %c0_i32 = arith.constant 0 : i32
    %c0_i32_0 = arith.constant 0 : i32
    return %arg0, %c0_i32 : i32, i32
  }
  func.func @transform_5(%arg0: i32) -> (i32, i32) {
    %c0_i32 = arith.constant 0 : i32
    %c0_i32_0 = arith.constant 0 : i32
    return %arg0, %c0_i32 : i32, i32
  }
}

module attributes {stable_mosaic.version = 11 : i64} {
  func.func @_bn_relu_kernel(%arg0: i32, %arg1: memref<128x128xf32, #tpu.memory_space<vmem>>, %arg2: memref<1x128xf32, #tpu.memory_space<vmem>>, %arg3: memref<1x128xf32, #tpu.memory_space<vmem>>, %arg4: memref<128x128xbf16, #tpu.memory_space<vmem>>) attributes {dimension_semantics = [#tpu.dimension_semantics<parallel>], iteration_bounds = array<i64: 4>, scalar_prefetch = 0 : i64, scratch_operands = 0 : i64, tpu.core_type = #tpu.core_type<tc>, window_params = [{transform_indices = @transform_0, window_bounds = array<i64: 128, 128>}, {pipeline_mode = #tpu.pipeline_mode<synchronous>, transform_indices = @transform_1, window_bounds = array<i64: 1, 128>}, {pipeline_mode = #tpu.pipeline_mode<synchronous>, transform_indices = @transform_2, window_bounds = array<i64: 1, 128>}, {transform_indices = @transform_3, window_bounds = array<i64: 128, 128>}]} {
    %c0 = arith.constant 0 : index
    %c0_0 = arith.constant 0 : index
    %0 = vector.load %arg1[%c0, %c0_0] : memref<128x128xf32, #tpu.memory_space<vmem>>, vector<128x128xf32>
    %c0_1 = arith.constant 0 : index
    %c0_2 = arith.constant 0 : index
    %1 = vector.load %arg2[%c0_1, %c0_2] : memref<1x128xf32, #tpu.memory_space<vmem>>, vector<1x128xf32>
    %2 = vector.broadcast %1 : vector<1x128xf32> to vector<128x128xf32>
    %3 = arith.mulf %0, %2 : vector<128x128xf32>
    %c0_3 = arith.constant 0 : index
    %c0_4 = arith.constant 0 : index
    %4 = vector.load %arg3[%c0_3, %c0_4] : memref<1x128xf32, #tpu.memory_space<vmem>>, vector<1x128xf32>
    %5 = vector.broadcast %4 : vector<1x128xf32> to vector<128x128xf32>
    %6 = arith.addf %3, %5 : vector<128x128xf32>
    %cst = arith.constant 0.000000e+00 : f32
    %7 = vector.broadcast %cst : f32 to vector<128x128xf32>
    %8 = arith.maximumf %6, %7 : vector<128x128xf32>
    %9 = arith.truncf %8 : vector<128x128xf32> to vector<128x128xbf16>
    %c0_5 = arith.constant 0 : index
    %c0_6 = arith.constant 0 : index
    %10 = vector.load %arg4[%c0_5, %c0_6] : memref<128x128xbf16, #tpu.memory_space<vmem>>, vector<128x128xbf16>
    tpu.vector_store %arg4[%c0_5, %c0_6], %9 {strides = array<i32>} : memref<128x128xbf16, #tpu.memory_space<vmem>>, vector<128x128xbf16>,
    return
  }
  func.func @transform_0(%arg0: i32) -> (i32, i32) {
    %c0_i32 = arith.constant 0 : i32
    %c0_i32_0 = arith.constant 0 : i32
    return %arg0, %c0_i32 : i32, i32
  }
  func.func @transform_1(%arg0: i32) -> (i32, i32) {
    %c0_i32 = arith.constant 0 : i32
    %c0_i32_0 = arith.constant 0 : i32
    %c0_i32_1 = arith.constant 0 : i32
    return %c0_i32, %c0_i32_0 : i32, i32
  }
  func.func @transform_2(%arg0: i32) -> (i32, i32) {
    %c0_i32 = arith.constant 0 : i32
    %c0_i32_0 = arith.constant 0 : i32
    %c0_i32_1 = arith.constant 0 : i32
    return %c0_i32, %c0_i32_0 : i32, i32
  }
  func.func @transform_3(%arg0: i32) -> (i32, i32) {
    %c0_i32 = arith.constant 0 : i32
    %c0_i32_0 = arith.constant 0 : i32
    return %arg0, %c0_i32 : i32, i32
  }
}

module attributes {stable_mosaic.version = 11 : i64} {
  func.func @_conv2_stats_kernel(%arg0: i32, %arg1: memref<128x128xbf16, #tpu.memory_space<vmem>>, %arg2: memref<128x128xbf16, #tpu.memory_space<vmem>>, %arg3: memref<128x128xf32, #tpu.memory_space<vmem>>, %arg4: memref<8x128xf32, #tpu.memory_space<vmem>>) attributes {dimension_semantics = [#tpu.dimension_semantics<parallel>], iteration_bounds = array<i64: 4>, scalar_prefetch = 0 : i64, scratch_operands = 0 : i64, tpu.core_type = #tpu.core_type<tc>, window_params = [{transform_indices = @transform_0, window_bounds = array<i64: 128, 128>}, {pipeline_mode = #tpu.pipeline_mode<synchronous>, transform_indices = @transform_1, window_bounds = array<i64: 128, 128>}, {transform_indices = @transform_2, window_bounds = array<i64: 128, 128>}, {transform_indices = @transform_3, window_bounds = array<i64: 8, 128>}]} {
    %c0 = arith.constant 0 : index
    %c0_0 = arith.constant 0 : index
    %0 = vector.load %arg1[%c0, %c0_0] : memref<128x128xbf16, #tpu.memory_space<vmem>>, vector<128x128xbf16>
    %c0_1 = arith.constant 0 : index
    %c0_2 = arith.constant 0 : index
    %1 = vector.load %arg2[%c0_1, %c0_2] : memref<128x128xbf16, #tpu.memory_space<vmem>>, vector<128x128xbf16>
    %cst = arith.constant dense<0.000000e+00> : vector<128x128xf32>
    %2 = tpu.matmul %0, %1, %cst {dimension_numbers = #tpu.dot_dimension_numbers<[1], [0], [0], [1], [0, 0, 1, 1], [], []>} : vector<128x128xbf16>, vector<128x128xbf16>, vector<128x128xf32> -> vector<128x128xf32>
    %c0_3 = arith.constant 0 : index
    %c0_4 = arith.constant 0 : index
    %3 = vector.load %arg3[%c0_3, %c0_4] : memref<128x128xf32, #tpu.memory_space<vmem>>, vector<128x128xf32>
    tpu.vector_store %arg3[%c0_3, %c0_4], %2 {strides = array<i32>} : memref<128x128xf32, #tpu.memory_space<vmem>>, vector<128x128xf32>,
    %cst_5 = arith.constant dense<0.000000e+00> : vector<128xf32>
    %4 = vector.multi_reduction <add>, %2, %cst_5 [0] : vector<128x128xf32> to vector<128xf32>
    %5 = vector.shape_cast %4 : vector<128xf32> to vector<1x128xf32>
    %6 = arith.mulf %2, %2 : vector<128x128xf32>
    %cst_6 = arith.constant dense<0.000000e+00> : vector<128xf32>
    %7 = vector.multi_reduction <add>, %6, %cst_6 [0] : vector<128x128xf32> to vector<128xf32>
    %8 = vector.shape_cast %7 : vector<128xf32> to vector<1x128xf32>
    %cst_7 = arith.constant 0.000000e+00 : f32
    %9 = vector.broadcast %cst_7 : f32 to vector<6x128xf32>
    %10 = tpu.concatenate %5, %8, %9 in 0 : vector<1x128xf32>, vector<1x128xf32>, vector<6x128xf32> -> vector<8x128xf32>
    %c0_8 = arith.constant 0 : index
    %c0_9 = arith.constant 0 : index
    %11 = vector.load %arg4[%c0_8, %c0_9] : memref<8x128xf32, #tpu.memory_space<vmem>>, vector<8x128xf32>
    tpu.vector_store %arg4[%c0_8, %c0_9], %10 {strides = array<i32>} : memref<8x128xf32, #tpu.memory_space<vmem>>, vector<8x128xf32>,
    return
  }
  func.func @transform_0(%arg0: i32) -> (i32, i32) {
    %c0_i32 = arith.constant 0 : i32
    %c0_i32_0 = arith.constant 0 : i32
    return %arg0, %c0_i32 : i32, i32
  }
  func.func @transform_1(%arg0: i32) -> (i32, i32) {
    %c0_i32 = arith.constant 0 : i32
    %c0_i32_0 = arith.constant 0 : i32
    %c0_i32_1 = arith.constant 0 : i32
    return %c0_i32, %c0_i32_0 : i32, i32
  }
  func.func @transform_2(%arg0: i32) -> (i32, i32) {
    %c0_i32 = arith.constant 0 : i32
    %c0_i32_0 = arith.constant 0 : i32
    return %arg0, %c0_i32 : i32, i32
  }
  func.func @transform_3(%arg0: i32) -> (i32, i32) {
    %c0_i32 = arith.constant 0 : i32
    %c0_i32_0 = arith.constant 0 : i32
    return %arg0, %c0_i32 : i32, i32
  }
}

module attributes {stable_mosaic.version = 11 : i64} {
  func.func @_bn_add_relu_kernel(%arg0: i32, %arg1: memref<128x128xf32, #tpu.memory_space<vmem>>, %arg2: memref<128x128xf32, #tpu.memory_space<vmem>>, %arg3: memref<1x128xf32, #tpu.memory_space<vmem>>, %arg4: memref<1x128xf32, #tpu.memory_space<vmem>>, %arg5: memref<1x128xf32, #tpu.memory_space<vmem>>, %arg6: memref<1x128xf32, #tpu.memory_space<vmem>>, %arg7: memref<128x128xf32, #tpu.memory_space<vmem>>) attributes {dimension_semantics = [#tpu.dimension_semantics<parallel>], iteration_bounds = array<i64: 4>, scalar_prefetch = 0 : i64, scratch_operands = 0 : i64, tpu.core_type = #tpu.core_type<tc>, window_params = [{transform_indices = @transform_0, window_bounds = array<i64: 128, 128>}, {transform_indices = @transform_1, window_bounds = array<i64: 128, 128>}, {pipeline_mode = #tpu.pipeline_mode<synchronous>, transform_indices = @transform_2, window_bounds = array<i64: 1, 128>}, {pipeline_mode = #tpu.pipeline_mode<synchronous>, transform_indices = @transform_3, window_bounds = array<i64: 1, 128>}, {pipeline_mode = #tpu.pipeline_mode<synchronous>, transform_indices = @transform_4, window_bounds = array<i64: 1, 128>}, {pipeline_mode = #tpu.pipeline_mode<synchronous>, transform_indices = @transform_5, window_bounds = array<i64: 1, 128>}, {transform_indices = @transform_6, window_bounds = array<i64: 128, 128>}]} {
    %c0 = arith.constant 0 : index
    %c0_0 = arith.constant 0 : index
    %0 = vector.load %arg1[%c0, %c0_0] : memref<128x128xf32, #tpu.memory_space<vmem>>, vector<128x128xf32>
    %c0_1 = arith.constant 0 : index
    %c0_2 = arith.constant 0 : index
    %1 = vector.load %arg3[%c0_1, %c0_2] : memref<1x128xf32, #tpu.memory_space<vmem>>, vector<1x128xf32>
    %2 = vector.broadcast %1 : vector<1x128xf32> to vector<128x128xf32>
    %3 = arith.mulf %0, %2 : vector<128x128xf32>
    %c0_3 = arith.constant 0 : index
    %c0_4 = arith.constant 0 : index
    %4 = vector.load %arg4[%c0_3, %c0_4] : memref<1x128xf32, #tpu.memory_space<vmem>>, vector<1x128xf32>
    %5 = vector.broadcast %4 : vector<1x128xf32> to vector<128x128xf32>
    %6 = arith.addf %3, %5 : vector<128x128xf32>
    %c0_5 = arith.constant 0 : index
    %c0_6 = arith.constant 0 : index
    %7 = vector.load %arg2[%c0_5, %c0_6] : memref<128x128xf32, #tpu.memory_space<vmem>>, vector<128x128xf32>
    %c0_7 = arith.constant 0 : index
    %c0_8 = arith.constant 0 : index
    %8 = vector.load %arg5[%c0_7, %c0_8] : memref<1x128xf32, #tpu.memory_space<vmem>>, vector<1x128xf32>
    %9 = vector.broadcast %8 : vector<1x128xf32> to vector<128x128xf32>
    %10 = arith.mulf %7, %9 : vector<128x128xf32>
    %c0_9 = arith.constant 0 : index
    %c0_10 = arith.constant 0 : index
    %11 = vector.load %arg6[%c0_9, %c0_10] : memref<1x128xf32, #tpu.memory_space<vmem>>, vector<1x128xf32>
    %12 = vector.broadcast %11 : vector<1x128xf32> to vector<128x128xf32>
    %13 = arith.addf %10, %12 : vector<128x128xf32>
    %14 = arith.addf %6, %13 : vector<128x128xf32>
    %cst = arith.constant 0.000000e+00 : f32
    %15 = vector.broadcast %cst : f32 to vector<128x128xf32>
    %16 = arith.maximumf %14, %15 : vector<128x128xf32>
    %c0_11 = arith.constant 0 : index
    %c0_12 = arith.constant 0 : index
    %17 = vector.load %arg7[%c0_11, %c0_12] : memref<128x128xf32, #tpu.memory_space<vmem>>, vector<128x128xf32>
    tpu.vector_store %arg7[%c0_11, %c0_12], %16 {strides = array<i32>} : memref<128x128xf32, #tpu.memory_space<vmem>>, vector<128x128xf32>,
    return
  }
  func.func @transform_0(%arg0: i32) -> (i32, i32) {
    %c0_i32 = arith.constant 0 : i32
    %c0_i32_0 = arith.constant 0 : i32
    return %arg0, %c0_i32 : i32, i32
  }
  func.func @transform_1(%arg0: i32) -> (i32, i32) {
    %c0_i32 = arith.constant 0 : i32
    %c0_i32_0 = arith.constant 0 : i32
    return %arg0, %c0_i32 : i32, i32
  }
  func.func @transform_2(%arg0: i32) -> (i32, i32) {
    %c0_i32 = arith.constant 0 : i32
    %c0_i32_0 = arith.constant 0 : i32
    %c0_i32_1 = arith.constant 0 : i32
    return %c0_i32, %c0_i32_0 : i32, i32
  }
  func.func @transform_3(%arg0: i32) -> (i32, i32) {
    %c0_i32 = arith.constant 0 : i32
    %c0_i32_0 = arith.constant 0 : i32
    %c0_i32_1 = arith.constant 0 : i32
    return %c0_i32, %c0_i32_0 : i32, i32
  }
  func.func @transform_4(%arg0: i32) -> (i32, i32) {
    %c0_i32 = arith.constant 0 : i32
    %c0_i32_0 = arith.constant 0 : i32
    %c0_i32_1 = arith.constant 0 : i32
    return %c0_i32, %c0_i32_0 : i32, i32
  }
  func.func @transform_5(%arg0: i32) -> (i32, i32) {
    %c0_i32 = arith.constant 0 : i32
    %c0_i32_0 = arith.constant 0 : i32
    %c0_i32_1 = arith.constant 0 : i32
    return %c0_i32, %c0_i32_0 : i32, i32
  }
  func.func @transform_6(%arg0: i32) -> (i32, i32) {
    %c0_i32 = arith.constant 0 : i32
    %c0_i32_0 = arith.constant 0 : i32
    return %arg0, %c0_i32 : i32, i32
  }
}

</mosaic_0001>

<bundles_post_ra>
// kernel: resblock_forward.5
= control target key start
LH: loop header
LB: loop body
LE: loop exit
PB: predicated region body
PF: predicated region fallthrough
CT: control target
= control target key end

     0   :  { %s430_s12 = smov 0   ;;  %s521_s0 = inlined_call_operand.vmem [shape: f32[512,128], index: 0, kind: input, shape index: {}]   ;;  %s522_s1 = inlined_call_operand.vmem [shape: f32[1,128], index: 1, kind: input, shape index: {}]   ;;  %s523_s2 = inlined_call_operand.vmem [shape: f32[1,128], index: 2, kind: input, shape index: {}]   ;;  %s524_s3 = inlined_call_operand.vmem [shape: bf16[512,128], index: 3, kind: output, shape index: {}]  }
   0x1 LB: > { %s334_s13 = sadd.s32 4294967295, %s408_s12   ;;  %p338_p0 = scmp.ge.s32.totalorder %s408_s12, 1  ;;  %s408_s12 = sphi %s430_s12, %s13_s12  }
   0x2   : > { %p138_p1 = scmp.lt.s32.totalorder %s408_s12, 5 }
   0x4   : > { %p139_p2 = pnand %p338_p0, %p138_p1 }
   0x5   : > { %s339_s14 = sshll.u32 (!%p139_p2), %s334_s13, 4 }
   0x6   : > { %142 = sbr.rel (%p139_p2) target bundleno = 35 (0x23), region = 32  ;;  %p163_p3 = scmp.lt.s32.totalorder (!%p139_p2), %s339_s14, 63 }
   0xb   : > { %s526_s14 = smov (!%p163_p3, %s339_s14), 63  ;;  %v443_v0 = vld [vmem:[%s522_s1] ss:$0 sm:$0xff] }
   0xc   : > { %s340_s17 = sshll.u32 %s526_s14, 3  ;;  %v454_v1 = vld [vmem:[%s523_s2] ss:$0 sm:$0xff]  ;;  %s342_s23 = sshll.u32 %s526_s14, 2 }
   0xd   : > { %s449_s20 = scalar_lea.vmem %s521_s0, %s340_s17  ;;  %s486_s26 = scalar_lea.vmem %s524_s3, %s342_s23 }
   0xe   : > { %v174_v2 = vld [vmem:[%s449_s20] sm:$0xff]  ;;  %v175_v3 = vld [vmem:[%s449_s20 + $0x8] sm:$0xff]  ;;  %v176_v4 = vld [vmem:[%s449_s20 + $0x10] sm:$0xff] }
   0xf   : > { %v194_v5 = vmul.f32 %v443_v0, %v174_v2  ;;  %v195_v6 = vmul.f32 %v443_v0, %v175_v3  ;;  %v177_v7 = vld [vmem:[%s449_s20 + $0x18] sm:$0xff]  ;;  %v196_v8 = vmul.f32 %v443_v0, %v176_v4  ;;  %v178_v9 = vld [vmem:[%s449_s20 + $0x20] sm:$0xff]  ;;  %v179_v10 = vld [vmem:[%s449_s20 + $0x28] sm:$0xff] }
  0x10   : > { %v197_v11 = vmul.f32 %v443_v0, %v177_v7  ;;  %v198_v12 = vmul.f32 %v443_v0, %v178_v9  ;;  %v199_v13 = vmul.f32 %v443_v0, %v179_v10  ;;  %v180_v14 = vld [vmem:[%s449_s20 + $0x30] sm:$0xff]  ;;  %v181_v15 = vld [vmem:[%s449_s20 + $0x38] sm:$0xff]  ;;  %v182_v24 = vld [vmem:[%s449_s20 + $0x40] sm:$0xff] }
  0x11   : > { %v214_v16 = vadd.f32 %v454_v1, %v194_v5  ;;  %v215_v17 = vadd.f32 %v454_v1, %v195_v6  ;;  %v216_v18 = vadd.f32 %v454_v1, %v196_v8  ;;  %v200_v19 = vmul.f32 %v443_v0, %v180_v14  ;;  %v183_v25 = vld [vmem:[%s449_s20 + $0x48] sm:$0xff]  ;;  %v184_v30 = vld [vmem:[%s449_s20 + $0x50] sm:$0xff]  ;;  %v185_v35 = vld [vmem:[%s449_s20 + $0x58] sm:$0xff] }
  0x12   : > { %v217_v20 = vadd.f32 %v454_v1, %v197_v11  ;;  %v218_v21 = vadd.f32 %v454_v1, %v198_v12  ;;  %v219_v22 = vadd.f32 %v454_v1, %v199_v13  ;;  %v201_v23 = vmul.f32 %v443_v0, %v181_v15  ;;  %v186_v36 = vld [vmem:[%s449_s20 + $0x60] sm:$0xff]  ;;  %v187_v41 = vld [vmem:[%s449_s20 + $0x68] sm:$0xff]  ;;  %v188_v42 = vld [vmem:[%s449_s20 + $0x70] sm:$0xff] }
  0x13   : > { %v230_v26 = vmax.f32 %v214_v16, 0.0  ;;  %v231_v27 = vmax.f32 %v215_v17, 0.0  ;;  %v232_v28 = vmax.f32 %v216_v18, 0.0  ;;  %v220_v29 = vadd.f32 %v454_v1, %v200_v19  ;;  %v189_v51 = vld [vmem:[%s449_s20 + $0x78] sm:$0xff] }
  0x14   : > { %v233_v31 = vmax.f32 %v217_v20, 0.0  ;;  %v234_v32 = vmax.f32 %v218_v21, 0.0  ;;  %v235_v33 = vmax.f32 %v219_v22, 0.0  ;;  %v221_v34 = vadd.f32 %v454_v1, %v201_v23 }
  0x15   : > { %v348_v37 = vpack.c.bf16 %v231_v27, %v230_v26  ;;  %v236_v38 = vmax.f32 %v220_v29, 0.0  ;;  %v202_v39 = vmul.f32 %v443_v0, %v182_v24  ;;  %v203_v40 = vmul.f32 %v443_v0, %v183_v25 }
  0x16   : > { %v353_v43 = vpack.c.bf16 %v233_v31, %v232_v28  ;;  %v358_v44 = vpack.c.bf16 %v235_v33, %v234_v32  ;;  %v237_v45 = vmax.f32 %v221_v34, 0.0  ;;  %v204_v46 = vmul.f32 %v443_v0, %v184_v30 }
  0x17   : > { %349 = vst [vmem:[%s486_s26] sm:$0xff] %v348_v37   ;;  %v222_v47 = vadd.f32 %v454_v1, %v202_v39  ;;  %v223_v48 = vadd.f32 %v454_v1, %v203_v40  ;;  %v205_v49 = vmul.f32 %v443_v0, %v185_v35  ;;  %v206_v50 = vmul.f32 %v443_v0, %v186_v36 }
  0x18   : > { %385 = vst [vmem:[%s486_s26 + $0x8] sm:$0xff] %v353_v43   ;;  %v363_v52 = vpack.c.bf16 %v237_v45, %v236_v38  ;;  %v224_v53 = vadd.f32 %v454_v1, %v204_v46  ;;  %v207_v54 = vmul.f32 %v443_v0, %v187_v41  ;;  %v208_v55 = vmul.f32 %v443_v0, %v188_v42 }
  0x19   : > { %386 = vst [vmem:[%s486_s26 + $0x10] sm:$0xff] %v358_v44   ;;  %v238_v56 = vmax.f32 %v222_v47, 0.0  ;;  %v239_v57 = vmax.f32 %v223_v48, 0.0  ;;  %v225_v58 = vadd.f32 %v454_v1, %v205_v49  ;;  %v226_v59 = vadd.f32 %v454_v1, %v206_v50 }
  0x1a   : > { %387 = vst [vmem:[%s486_s26 + $0x18] sm:$0xff] %v363_v52   ;;  %v240_v60 = vmax.f32 %v224_v53, 0.0  ;;  %v227_v61 = vadd.f32 %v454_v1, %v207_v54  ;;  %v209_v62 = vmul.f32 %v443_v0, %v189_v51  ;;  %v228_v63 = vadd.f32 %v454_v1, %v208_v55 }
  0x1b   : > { %v368_v2 = vpack.c.bf16 %v239_v57, %v238_v56  ;;  %v241_v3 = vmax.f32 %v225_v58, 0.0  ;;  %v242_v4 = vmax.f32 %v226_v59, 0.0 }
  0x1c   : > { %v243_v5 = vmax.f32 %v227_v61, 0.0  ;;  %v229_v6 = vadd.f32 %v454_v1, %v209_v62  ;;  %v244_v7 = vmax.f32 %v228_v63, 0.0 }
  0x1d   : > { %388 = vst [vmem:[%s486_s26 + $0x20] sm:$0xff] %v368_v2   ;;  %v373_v8 = vpack.c.bf16 %v241_v3, %v240_v60 }
  0x1e   : > { %v378_v9 = vpack.c.bf16 %v243_v5, %v242_v4  ;;  %v245_v10 = vmax.f32 %v229_v6, 0.0 }
  0x1f   : > { %389 = vst [vmem:[%s486_s26 + $0x28] sm:$0xff] %v373_v8  }
  0x20   : > { %390 = vst [vmem:[%s486_s26 + $0x30] sm:$0xff] %v378_v9   ;;  %v383_v11 = vpack.c.bf16 %v245_v10, %v244_v7 }
  0x22   : > { %391 = vst [vmem:[%s486_s26 + $0x38] sm:$0xff] %v383_v11  }
  0x23 PF: > { %s13_s12 = sadd.s32 1, %s408_s12  }
  0x24   : > { %p10_p4 = scmp.ge.s32.totalorder %s13_s12, 6  }
  0x26   :  { %12 = sbr.rel (!%p10_p4) target bundleno = 1 (0x1), region = 62 }

// kernel: resblock_forward.4
= control target key start
LH: loop header
LB: loop body
LE: loop exit
PB: predicated region body
PF: predicated region fallthrough
CT: control target
= control target key end

     0   :  { %s1016_s18 = smov 0   ;;  %s1204_s0 = inlined_call_operand.vmem [shape: bf16[512,128], index: 0, kind: input, shape index: {}]   ;;  %s1205_s1 = inlined_call_operand.vmem [shape: bf16[128,128], index: 1, kind: input, shape index: {}]   ;;  %s1206_s2 = inlined_call_operand.vmem [shape: bf16[128,128], index: 2, kind: input, shape index: {}]   ;;  %s1207_s3 = inlined_call_operand.vmem [shape: f32[512,128], index: 3, kind: output, shape index: {0}]   ;;  %s1208_s4 = inlined_call_operand.vmem [shape: f32[512,128], index: 4, kind: output, shape index: {1}]   ;;  %s1209_s5 = inlined_call_operand.vmem [shape: f32[32,128], index: 5, kind: output, shape index: {2}]  }
   0x1 LB: > { %s1022_s19 = sadd.s32 4294967295, %s984_s18   ;;  %p824_p0 = scmp.ge.s32.totalorder %s984_s18, 1  ;;  %s984_s18 = sphi %s1016_s18, %s16_s18  }
   0x2   : > { %p193_p1 = scmp.lt.s32.totalorder %s984_s18, 5 }
   0x4   : > { %p194_p2 = pnand %p824_p0, %p193_p1 }
   0x5   : > { %s825_s11 = sshll.u32 (!%p194_p2), %s1022_s19, 4  ;;  %p248_p4 = scmp.lt.s32.totalorder (!%p194_p2), %s1022_s19, 3 }
   0x6   : > { %197 = sbr.rel (%p194_p2) target bundleno = 262 (0x106), region = 32  ;;  %p231_p3 = scmp.lt.s32.totalorder (!%p194_p2), %s825_s11, 63 }
   0xb   : > { %v945_v0 = vld [vmem:[%s1205_s1 + $0x38] sm:$0xff]  ;;  %v944_v2 = vld [vmem:[%s1205_s1 + $0x30] sm:$0xff]  ;;  %v943_v4 = vld [vmem:[%s1205_s1 + $0x28] sm:$0xff]  ;;  %s1211_s11 = smov (!%p231_p3, %s825_s11), 63  ;;  %s1213_s19 = smov (!%p248_p4, %s1022_s19), 3  ;;  %vm690_vm0 = vcmask 1040384  }
   0xc   : > { %v953_v1 = vld [vmem:[%s1206_s2 + $0x38] sm:$0xff]  ;;  %380 = vmatpush.bf16.msra.mxu0 %v945_v0  ;;  %v952_v3 = vld [vmem:[%s1206_s2 + $0x30] sm:$0xff]  ;;  %954 = vmatpush.bf16.msra.mxu2 %v945_v0  ;;  %v951_v5 = vld [vmem:[%s1206_s2 + $0x28] sm:$0xff]  ;;  %s826_s26 = sshll.u32 %s1211_s11, 2  ;;  %s828_s9 = sshll.u32 %s1211_s11, 3  ;;  %vm692_vm1 = vcmask 1041408  }
   0xd   : > { %493 = vmatpush.bf16.msra.mxu1 %v953_v1  ;;  %962 = vmatpush.bf16.msra.mxu3 %v953_v1  ;;  %v942_v6 = vld [vmem:[%s1205_s1 + $0x20] sm:$0xff]  ;;  %v941_v8 = vld [vmem:[%s1205_s1 + $0x18] sm:$0xff]  ;;  %v940_v10 = vld [vmem:[%s1205_s1 + $0x10] sm:$0xff]  ;;  %s234_s8 = scalar_lea.vmem %s1204_s0, %s826_s26  ;;  %s1085_s13 = scalar_lea.vmem %s1207_s3, %s828_s9  ;;  %vm694_vm2 = vcmask 1042432   ;;  %vm696_vm3 = vcmask 1043456  }
   0xe   : > { %v950_v7 = vld [vmem:[%s1206_s2 + $0x20] sm:$0xff]  ;;  %v949_v9 = vld [vmem:[%s1206_s2 + $0x18] sm:$0xff]  ;;  %v948_v11 = vld [vmem:[%s1206_s2 + $0x10] sm:$0xff]  ;;  %s1090_s16 = scalar_lea.vmem %s1208_s4, %s828_s9  ;;  %s831_s11 = sshll.u32 %s1213_s19, 3 }
   0xf   : > { %v939_v12 = vld [vmem:[%s1205_s1 + $0x8] sm:$0xff]  ;;  %v938_v14 = vld [vmem:[%s1205_s1] sm:$0xff]  ;;  %v932_v20 = vld [vmem:[%s234_s8 + $0x10] sm:$0xff]  ;;  %s251_s21 = scalar_lea.vmem %s1209_s5, %s831_s11 }
  0x10   : > { %381 = vmatpush.bf16.msra.mxu0 %v944_v2  ;;  %955 = vmatpush.bf16.msra.mxu2 %v944_v2  ;;  %v947_v13 = vld [vmem:[%s1206_s2 + $0x8] sm:$0xff]  ;;  %v946_v15 = vld [vmem:[%s1206_s2] sm:$0xff]  ;;  %v936_v21 = vld [vmem:[%s234_s8 + $0x30] sm:$0xff] }
  0x11   : > { %494 = vmatpush.bf16.msra.mxu1 %v952_v3  ;;  %963 = vmatpush.bf16.msra.mxu3 %v952_v3  ;;  %v930_v16 = vld [vmem:[%s234_s8] sm:$0xff]  ;;  %v931_v18 = vld [vmem:[%s234_s8 + $0x8] sm:$0xff]  ;;  %v933_v22 = vld [vmem:[%s234_s8 + $0x18] sm:$0xff] }
  0x12   : > { %v934_v17 = vld [vmem:[%s234_s8 + $0x20] sm:$0xff]  ;;  %v935_v19 = vld [vmem:[%s234_s8 + $0x28] sm:$0xff]  ;;  %v937_v23 = vld [vmem:[%s234_s8 + $0x38] sm:$0xff] }
  0x14   : > { %382 = vmatpush.bf16.msra.mxu0 %v943_v4  ;;  %956 = vmatpush.bf16.msra.mxu2 %v943_v4 }
  0x15   : > { %495 = vmatpush.bf16.msra.mxu1 %v951_v5  ;;  %964 = vmatpush.bf16.msra.mxu3 %v951_v5 }
  0x18   : > { %383 = vmatpush.bf16.msra.mxu0 %v942_v6  ;;  %957 = vmatpush.bf16.msra.mxu2 %v942_v6 }
  0x19   : > { %496 = vmatpush.bf16.msra.mxu1 %v950_v7  ;;  %965 = vmatpush.bf16.msra.mxu3 %v950_v7 }
  0x1c   : > { %384 = vmatpush.bf16.msra.mxu0 %v941_v8  ;;  %958 = vmatpush.bf16.msra.mxu2 %v941_v8 }
  0x1d   : > { %497 = vmatpush.bf16.msra.mxu1 %v949_v9  ;;  %966 = vmatpush.bf16.msra.mxu3 %v949_v9 }
  0x20   : > { %385 = vmatpush.bf16.msra.mxu0 %v940_v10  ;;  %959 = vmatpush.bf16.msra.mxu2 %v940_v10 }
  0x21   : > { %498 = vmatpush.bf16.msra.mxu1 %v948_v11  ;;  %967 = vmatpush.bf16.msra.mxu3 %v948_v11 }
  0x24   : > { %386 = vmatpush.bf16.msra.mxu0 %v939_v12  ;;  %960 = vmatpush.bf16.msra.mxu2 %v939_v12 }
  0x25   : > { %499 = vmatpush.bf16.msra.mxu1 %v947_v13  ;;  %968 = vmatpush.bf16.msra.mxu3 %v947_v13 }
  0x28   : > { %387 = vmatpush.bf16.msra.mxu0 %v938_v14  ;;  %961 = vmatpush.bf16.msra.mxu2 %v938_v14 }
  0x29   : > { %500 = vmatpush.bf16.msra.mxu1 %v946_v15  ;;  %969 = vmatpush.bf16.msra.mxu3 %v946_v15 }
  0x2b   : > { %388 = vmatmul.bf16.vlgmr.msra.gmra.mxu0 %v930_v16  ;;  %408 = vmatmul.bf16.vlgmr.msra.gmra.mxu2 %v934_v17 }
  0x2c   : > { %501 = vmatmul.bf16.vlgmr.msra.gmra.mxu1 %v930_v16  ;;  %521 = vmatmul.bf16.vlgmr.msra.gmra.mxu3 %v934_v17 }
  0x3b   : > { %393 = vmatmul.bf16.gmra.mxu0 %v931_v18  ;;  %413 = vmatmul.bf16.gmra.mxu2 %v935_v19 }
  0x3c   : > { %506 = vmatmul.bf16.gmra.mxu1 %v931_v18  ;;  %526 = vmatmul.bf16.gmra.mxu3 %v935_v19 }
  0x4b   : > { %398 = vmatmul.bf16.gmra.mxu0 %v932_v20  ;;  %418 = vmatmul.bf16.gmra.mxu2 %v936_v21 }
  0x4c   : > { %511 = vmatmul.bf16.gmra.mxu1 %v932_v20  ;;  %531 = vmatmul.bf16.gmra.mxu3 %v936_v21 }
  0x5b   : > { %403 = vmatmul.bf16.gmra.mxu0 %v933_v22  ;;  %423 = vmatmul.bf16.gmra.mxu2 %v937_v23 }
  0x5c   : > { %516 = vmatmul.bf16.gmra.mxu1 %v933_v22  ;;  %536 = vmatmul.bf16.gmra.mxu3 %v937_v23 }
  0xa8   : > { %v389_v24 = vpop.f32.mrf.mxu0 }
  0xa9   : > { %v502_v25 = vpop.f32.mrf.mxu1  ;;  %542 = vst [vmem:[%s1085_s13] sm:$0xff] %v389_v24  ;;  %v595_v48 = vmul.f32 %v389_v24, %v389_v24 }
  0xaa   : > { %558 = vst [vmem:[%s1090_s16] sm:$0xff] %v502_v25  ;;  %v653_v49 = vmul.f32 %v502_v25, %v502_v25 }
  0xae   : > { %v1094_v26 = vpop.f32.mrf.mxu2 }
  0xaf   : > { %v1096_v27 = vpop.f32.mrf.mxu3  ;;  %550 = vst [vmem:[%s1085_s13 + $0x40] sm:$0xff] %v1094_v26 }
  0xb0   : > { %v391_v28 = vpop.f32.mrf.mxu0  ;;  %566 = vst [vmem:[%s1090_s16 + $0x40] sm:$0xff] %v1096_v27 }
  0xb1   : > { %v504_v29 = vpop.f32.mrf.mxu1  ;;  %543 = vst [vmem:[%s1085_s13 + $0x8] sm:$0xff] %v391_v28  ;;  %v596_v46 = vmul.f32 %v391_v28, %v391_v28  ;;  %v574_v52 = vadd.f32 %v391_v28, %v389_v24 }
  0xb2   : > { %559 = vst [vmem:[%s1090_s16 + $0x8] sm:$0xff] %v504_v29  ;;  %v654_v47 = vmul.f32 %v504_v29, %v504_v29  ;;  %v632_v53 = vadd.f32 %v504_v29, %v502_v25 }
  0xb3   : > { %v611_v54 = vadd.f32 %v596_v46, %v595_v48 }
  0xb4   : > { %v669_v55 = vadd.f32 %v654_v47, %v653_v49 }
  0xb6   : > { %v1104_v30 = vpop.f32.mrf.mxu2 }
  0xb7   : > { %v1106_v31 = vpop.f32.mrf.mxu3  ;;  %551 = vst [vmem:[%s1085_s13 + $0x48] sm:$0xff] %v1104_v30  ;;  %v604_v48 = vmul.f32 %v1104_v30, %v1104_v30 }
  0xb8   : > { %v394_v32 = vpop.f32.mrf.mxu0  ;;  %567 = vst [vmem:[%s1090_s16 + $0x48] sm:$0xff] %v1106_v31  ;;  %v662_v49 = vmul.f32 %v1106_v31, %v1106_v31 }
  0xb9   : > { %v507_v33 = vpop.f32.mrf.mxu1  ;;  %544 = vst [vmem:[%s1085_s13 + $0x10] sm:$0xff] %v394_v32  ;;  %v597_v50 = vmul.f32 %v394_v32, %v394_v32  ;;  %v575_v58 = vadd.f32 %v574_v52, %v394_v32 }
  0xba   : > { %560 = vst [vmem:[%s1090_s16 + $0x10] sm:$0xff] %v507_v33  ;;  %v655_v51 = vmul.f32 %v507_v33, %v507_v33  ;;  %v633_v59 = vadd.f32 %v632_v53, %v507_v33 }
  0xbb   : > { %v612_v62 = vadd.f32 %v611_v54, %v597_v50 }
  0xbc   : > { %v670_v63 = vadd.f32 %v669_v55, %v655_v51 }
  0xbe   : > { %v1114_v34 = vpop.f32.mrf.mxu2 }
  0xbf   : > { %v1116_v35 = vpop.f32.mrf.mxu3  ;;  %552 = vst [vmem:[%s1085_s13 + $0x50] sm:$0xff] %v1114_v34 }
  0xc0   : > { %v396_v36 = vpop.f32.mrf.mxu0  ;;  %568 = vst [vmem:[%s1090_s16 + $0x50] sm:$0xff] %v1116_v35 }
  0xc1   : > { %v509_v37 = vpop.f32.mrf.mxu1  ;;  %545 = vst [vmem:[%s1085_s13 + $0x18] sm:$0xff] %v396_v36  ;;  %v598_v56 = vmul.f32 %v396_v36, %v396_v36  ;;  %v576_v4 = vadd.f32 %v575_v58, %v396_v36 }
  0xc2   : > { %561 = vst [vmem:[%s1090_s16 + $0x18] sm:$0xff] %v509_v37  ;;  %v656_v57 = vmul.f32 %v509_v37, %v509_v37  ;;  %v634_v5 = vadd.f32 %v633_v59, %v509_v37 }
  0xc3   : > { %v613_v6 = vadd.f32 %v612_v62, %v598_v56 }
  0xc4   : > { %v671_v7 = vadd.f32 %v670_v63, %v656_v57 }
  0xc6   : > { %v1124_v38 = vpop.f32.mrf.mxu2 }
  0xc7   : > { %v1126_v39 = vpop.f32.mrf.mxu3  ;;  %553 = vst [vmem:[%s1085_s13 + $0x58] sm:$0xff] %v1124_v38 }
  0xc8   : > { %v399_v40 = vpop.f32.mrf.mxu0  ;;  %569 = vst [vmem:[%s1090_s16 + $0x58] sm:$0xff] %v1126_v39 }
  0xc9   : > { %v512_v41 = vpop.f32.mrf.mxu1  ;;  %546 = vst [vmem:[%s1085_s13 + $0x20] sm:$0xff] %v399_v40  ;;  %v599_v0 = vmul.f32 %v399_v40, %v399_v40  ;;  %v577_v10 = vadd.f32 %v576_v4, %v399_v40  ;;  %v603_v40 = vmul.f32 %v1094_v26, %v1094_v26 }
  0xca   : > { %562 = vst [vmem:[%s1090_s16 + $0x20] sm:$0xff] %v512_v41  ;;  %v657_v1 = vmul.f32 %v512_v41, %v512_v41  ;;  %v635_v11 = vadd.f32 %v634_v5, %v512_v41  ;;  %v661_v41 = vmul.f32 %v1096_v27, %v1096_v27 }
  0xcb   : > { %v614_v12 = vadd.f32 %v613_v6, %v599_v0 }
  0xcc   : > { %v672_v13 = vadd.f32 %v671_v7, %v657_v1 }
  0xce   : > { %v1134_v42 = vpop.f32.mrf.mxu2 }
  0xcf   : > { %v1136_v43 = vpop.f32.mrf.mxu3  ;;  %554 = vst [vmem:[%s1085_s13 + $0x60] sm:$0xff] %v1134_v42 }
  0xd0   : > { %v401_v44 = vpop.f32.mrf.mxu0  ;;  %570 = vst [vmem:[%s1090_s16 + $0x60] sm:$0xff] %v1136_v43 }
  0xd1   : > { %v514_v45 = vpop.f32.mrf.mxu1  ;;  %547 = vst [vmem:[%s1085_s13 + $0x28] sm:$0xff] %v401_v44  ;;  %v600_v8 = vmul.f32 %v401_v44, %v401_v44  ;;  %v578_v16 = vadd.f32 %v577_v10, %v401_v44 }
  0xd2   : > { %563 = vst [vmem:[%s1090_s16 + $0x28] sm:$0xff] %v514_v45  ;;  %v658_v9 = vmul.f32 %v514_v45, %v514_v45  ;;  %v636_v17 = vadd.f32 %v635_v11, %v514_v45 }
  0xd3   : > { %v615_v18 = vadd.f32 %v614_v12, %v600_v8 }
  0xd4   : > { %v673_v19 = vadd.f32 %v672_v13, %v658_v9 }
  0xd6   : > { %v1144_v60 = vpop.f32.mrf.mxu2 }
  0xd7   : > { %v1146_v61 = vpop.f32.mrf.mxu3  ;;  %555 = vst [vmem:[%s1085_s13 + $0x68] sm:$0xff] %v1144_v60  ;;  %v608_v6 = vmul.f32 %v1144_v60, %v1144_v60 }
  0xd8   : > { %v404_v2 = vpop.f32.mrf.mxu0  ;;  %571 = vst [vmem:[%s1090_s16 + $0x68] sm:$0xff] %v1146_v61 }
  0xd9   : > { %v517_v3 = vpop.f32.mrf.mxu1  ;;  %548 = vst [vmem:[%s1085_s13 + $0x30] sm:$0xff] %v404_v2  ;;  %v601_v14 = vmul.f32 %v404_v2, %v404_v2  ;;  %v579_v20 = vadd.f32 %v578_v16, %v404_v2 }
  0xda   : > { %564 = vst [vmem:[%s1090_s16 + $0x30] sm:$0xff] %v517_v3  ;;  %v659_v15 = vmul.f32 %v517_v3, %v517_v3  ;;  %v637_v21 = vadd.f32 %v636_v17, %v517_v3 }
  0xdb   : > { %v616_v24 = vadd.f32 %v615_v18, %v601_v14 }
  0xdc   : > { %v674_v25 = vadd.f32 %v673_v19, %v659_v15 }
  0xde   : > { %v424_v22 = vpop.f32.mrf.mxu2 }
  0xdf   : > { %v537_v23 = vpop.f32.mrf.mxu3  ;;  %556 = vst [vmem:[%s1085_s13 + $0x70] sm:$0xff] %v424_v22  ;;  %v609_v10 = vmul.f32 %v424_v22, %v424_v22 }
  0xe0   : > { %v406_v28 = vpop.f32.mrf.mxu0  ;;  %572 = vst [vmem:[%s1090_s16 + $0x70] sm:$0xff] %v537_v23  ;;  %v667_v11 = vmul.f32 %v537_v23, %v537_v23 }
  0xe1   : > { %v519_v29 = vpop.f32.mrf.mxu1  ;;  %549 = vst [vmem:[%s1085_s13 + $0x38] sm:$0xff] %v406_v28  ;;  %v580_v32 = vadd.f32 %v579_v20, %v406_v28  ;;  %v602_v33 = vmul.f32 %v406_v28, %v406_v28 }
  0xe2   : > { %v638_v36 = vadd.f32 %v637_v21, %v519_v29  ;;  %v660_v37 = vmul.f32 %v519_v29, %v519_v29  ;;  %565 = vst [vmem:[%s1090_s16 + $0x38] sm:$0xff] %v519_v29 }
  0xe3   : > { %v581_v44 = vadd.f32 %v580_v32, %v1094_v26  ;;  %v617_v45 = vadd.f32 %v616_v24, %v602_v33  ;;  %v605_v26 = vmul.f32 %v1114_v34, %v1114_v34 }
  0xe4   : > { %v639_v46 = vadd.f32 %v638_v36, %v1096_v27  ;;  %v675_v47 = vadd.f32 %v674_v25, %v660_v37  ;;  %v663_v27 = vmul.f32 %v1116_v35, %v1116_v35 }
  0xe5   : > { %v582_v50 = vadd.f32 %v581_v44, %v1104_v30  ;;  %v618_v51 = vadd.f32 %v617_v45, %v603_v40  ;;  %v606_v30 = vmul.f32 %v1124_v38, %v1124_v38 }
  0xe6   : > { %v640_v52 = vadd.f32 %v639_v46, %v1106_v31  ;;  %v676_v53 = vadd.f32 %v675_v47, %v661_v41  ;;  %v426_v58 = vpop.f32.mrf.mxu2  ;;  %v664_v31 = vmul.f32 %v1126_v39, %v1126_v39 }
  0xe7   : > { %v583_v54 = vadd.f32 %v582_v50, %v1114_v34  ;;  %v619_v55 = vadd.f32 %v618_v51, %v604_v48  ;;  %v539_v59 = vpop.f32.mrf.mxu3  ;;  %557 = vst [vmem:[%s1085_s13 + $0x78] sm:$0xff] %v426_v58  ;;  %v607_v34 = vmul.f32 %v1134_v42, %v1134_v42 }
  0xe8   : > { %v641_v56 = vadd.f32 %v640_v52, %v1116_v35  ;;  %v677_v57 = vadd.f32 %v676_v53, %v662_v49  ;;  %573 = vst [vmem:[%s1090_s16 + $0x78] sm:$0xff] %v539_v59  ;;  %v665_v35 = vmul.f32 %v1136_v43, %v1136_v43  ;;  %v668_v15 = vmul.f32 %v539_v59, %v539_v59 }
  0xe9   : > { %v620_v62 = vadd.f32 %v619_v55, %v605_v26  ;;  %v584_v63 = vadd.f32 %v583_v54, %v1124_v38  ;;  %v666_v38 = vmul.f32 %v1146_v61, %v1146_v61 }
  0xea   : > { %v678_v0 = vadd.f32 %v677_v57, %v663_v27  ;;  %v642_v1 = vadd.f32 %v641_v56, %v1126_v39 }
  0xeb   : > { %v585_v2 = vadd.f32 %v584_v63, %v1134_v42  ;;  %v621_v3 = vadd.f32 %v620_v62, %v606_v30 }
  0xec   : > { %v643_v4 = vadd.f32 %v642_v1, %v1136_v43  ;;  %v679_v5 = vadd.f32 %v678_v0, %v664_v31  ;;  %v610_v43 = vmul.f32 %v426_v58, %v426_v58 }
  0xed   : > { %v586_v39 = vadd.f32 %v585_v2, %v1144_v60  ;;  %v622_v7 = vadd.f32 %v621_v3, %v607_v34 }
  0xee   : > { %v644_v8 = vadd.f32 %v643_v4, %v1146_v61  ;;  %v680_v9 = vadd.f32 %v679_v5, %v665_v35 }
  0xef   : > { %v587_v12 = vadd.f32 %v586_v39, %v424_v22  ;;  %v623_v42 = vadd.f32 %v622_v7, %v608_v6 }
  0xf0   : > { %v645_v13 = vadd.f32 %v644_v8, %v537_v23  ;;  %v681_v14 = vadd.f32 %v680_v9, %v666_v38 }
  0xf1   : > { %v624_v16 = vadd.f32 %v623_v42, %v609_v10  ;;  %v588_v18 = vadd.f32 %v587_v12, %v426_v58 }
  0xf2   : > { %v682_v17 = vadd.f32 %v681_v14, %v667_v11  ;;  %v646_v19 = vadd.f32 %v645_v13, %v539_v59 }
  0xf3   : > { %v589_v20 = vrot.slane %v588_v18, 4  ;;  %v625_v21 = vadd.f32 %v624_v16, %v610_v43 }
  0xf4   : > { %v647_v60 = vrot.slane %v646_v19, 4  ;;  %v683_v24 = vadd.f32 %v682_v17, %v668_v15 }
  0xf5   : > { %v590_v61 = vadd.f32 %v589_v20, %v588_v18  ;;  %v626_v25 = vrot.slane %v625_v21, 4 }
  0xf6   : > { %v648_v28 = vadd.f32 %v647_v60, %v646_v19  ;;  %v684_v29 = vrot.slane %v683_v24, 4 }
  0xf7   : > { %v591_v22 = vrot.slane %v590_v61, 2  ;;  %v627_v32 = vadd.f32 %v626_v25, %v625_v21 }
  0xf8   : > { %v649_v23 = vrot.slane %v648_v28, 2  ;;  %v685_v33 = vadd.f32 %v684_v29, %v683_v24 }
  0xf9   : > { %v592_v36 = vadd.f32 %v591_v22, %v590_v61  ;;  %v628_v37 = vrot.slane %v627_v32, 2 }
  0xfa   : > { %v650_v40 = vadd.f32 %v649_v23, %v648_v28  ;;  %v686_v41 = vrot.slane %v685_v33, 2 }
  0xfb   : > { %v593_v44 = vrot.slane %v592_v36, 1  ;;  %v629_v45 = vadd.f32 %v628_v37, %v627_v32 }
  0xfc   : > { %v687_v46 = vadd.f32 %v686_v41, %v685_v33  ;;  %v651_v47 = vrot.slane %v650_v40, 1 }
  0xfd   : > { %v630_v48 = vrot.slane %v629_v45, 1  ;;  %v594_v50 = vadd.f32 %v593_v44, %v592_v36 }
  0xfe   : > { %v688_v49 = vrot.slane %v687_v46, 1  ;;  %v652_v52 = vadd.f32 %v651_v47, %v650_v40 }
  0xff   : > { %v631_v51 = vadd.f32 %v630_v48, %v629_v45 }
 0x100   : > { %v689_v26 = vadd.f32 %v688_v49, %v687_v46 }
 0x101   : > { %v691_v53 = vsel %vm690_vm0, %v594_v50, %v631_v51 }
 0x102   : > { %v693_v27 = vsel %vm692_vm1, %v691_v53, %v652_v52 }
 0x103   : > { %v695_v54 = vsel %vm694_vm2, %v693_v27, %v689_v26 }
 0x104   : > { %v697_v55 = vsel %vm696_vm3, %v695_v54, 0.0 }
 0x105   : > { %698 = vst [vmem:[%s251_s21] sm:$0xff] %v697_v55 }
 0x106 PF: > { %s16_s18 = sadd.s32 1, %s984_s18  }
 0x107   : > { %p13_p5 = scmp.ge.s32.totalorder %s16_s18, 6  }
 0x109   :  { %15 = sbr.rel (!%p13_p5) target bundleno = 1 (0x1), region = 86 }

// kernel: resblock_forward.6
= control target key start
LH: loop header
LB: loop body
LE: loop exit
PB: predicated region body
PF: predicated region fallthrough
CT: control target
= control target key end

     0   :  { %s680_s12 = smov 0   ;;  %s751_s0 = inlined_call_operand.vmem [shape: bf16[512,128], index: 0, kind: input, shape index: {}]   ;;  %s752_s1 = inlined_call_operand.vmem [shape: bf16[128,128], index: 1, kind: input, shape index: {}]   ;;  %s753_s2 = inlined_call_operand.vmem [shape: f32[512,128], index: 2, kind: output, shape index: {0}]   ;;  %s754_s3 = inlined_call_operand.vmem [shape: f32[32,128], index: 3, kind: output, shape index: {1}]  }
   0x1 LB: > { %s686_s13 = sadd.s32 4294967295, %s658_s12   ;;  %p532_p0 = scmp.ge.s32.totalorder %s658_s12, 1  ;;  %s658_s12 = sphi %s680_s12, %s14_s12  }
   0x2   : > { %p141_p1 = scmp.lt.s32.totalorder %s658_s12, 5 }
   0x4   : > { %p142_p2 = pnand %p532_p0, %p141_p1 }
   0x5   : > { %s533_s22 = sshll.u32 (!%p142_p2), %s686_s13, 4  ;;  %p181_p4 = scmp.lt.s32.totalorder (!%p142_p2), %s686_s13, 3 }
   0x6   : > { %145 = sbr.rel (%p142_p2) target bundleno = 236 (0xec), region = 28  ;;  %p170_p3 = scmp.lt.s32.totalorder (!%p142_p2), %s533_s22, 63 }
   0xb   : > { %v619_v0 = vld [vmem:[%s752_s1 + $0x38] sm:$0xff]  ;;  %v618_v1 = vld [vmem:[%s752_s1 + $0x30] sm:$0xff]  ;;  %v617_v2 = vld [vmem:[%s752_s1 + $0x28] sm:$0xff]  ;;  %s756_s22 = smov (!%p170_p3, %s533_s22), 63  ;;  %s758_s13 = smov (!%p181_p4, %s686_s13), 3  ;;  %vm436_vm0 = vcmask 1040384  }
   0xc   : > { %313 = vmatpush.bf16.msra.mxu0 %v619_v0  ;;  %620 = vmatpush.bf16.msra.mxu1 %v619_v0  ;;  %v616_v3 = vld [vmem:[%s752_s1 + $0x20] sm:$0xff]  ;;  %v615_v4 = vld [vmem:[%s752_s1 + $0x18] sm:$0xff]  ;;  %v614_v5 = vld [vmem:[%s752_s1 + $0x10] sm:$0xff]  ;;  %s534_s29 = sshll.u32 %s756_s22, 2  ;;  %s536_s8 = sshll.u32 %s756_s22, 3  ;;  %vm438_vm1 = vcmask 1041408  }
   0xd   : > { %621 = vmatpush.bf16.msra.mxu2 %v619_v0  ;;  %622 = vmatpush.bf16.msra.mxu3 %v619_v0  ;;  %v613_v6 = vld [vmem:[%s752_s1 + $0x8] sm:$0xff]  ;;  %v612_v7 = vld [vmem:[%s752_s1] sm:$0xff]  ;;  %s173_s7 = scalar_lea.vmem %s751_s0, %s534_s29  ;;  %s725_s11 = scalar_lea.vmem %s753_s2, %s536_s8 }
   0xe   : > { %v604_v8 = vld [vmem:[%s173_s7] sm:$0xff]  ;;  %v606_v9 = vld [vmem:[%s173_s7 + $0x10] sm:$0xff]  ;;  %v605_v12 = vld [vmem:[%s173_s7 + $0x8] sm:$0xff]  ;;  %s537_s14 = sshll.u32 %s758_s13, 3 }
   0xf   : > { %v608_v10 = vld [vmem:[%s173_s7 + $0x20] sm:$0xff]  ;;  %v610_v11 = vld [vmem:[%s173_s7 + $0x30] sm:$0xff]  ;;  %v607_v13 = vld [vmem:[%s173_s7 + $0x18] sm:$0xff]  ;;  %s184_s17 = scalar_lea.vmem %s754_s3, %s537_s14 }
  0x10   : > { %314 = vmatpush.bf16.msra.mxu0 %v618_v1  ;;  %623 = vmatpush.bf16.msra.mxu1 %v618_v1  ;;  %v609_v14 = vld [vmem:[%s173_s7 + $0x28] sm:$0xff]  ;;  %v611_v15 = vld [vmem:[%s173_s7 + $0x38] sm:$0xff] }
  0x11   : > { %624 = vmatpush.bf16.msra.mxu2 %v618_v1  ;;  %625 = vmatpush.bf16.msra.mxu3 %v618_v1 }
  0x14   : > { %315 = vmatpush.bf16.msra.mxu0 %v617_v2  ;;  %626 = vmatpush.bf16.msra.mxu1 %v617_v2 }
  0x15   : > { %627 = vmatpush.bf16.msra.mxu2 %v617_v2  ;;  %628 = vmatpush.bf16.msra.mxu3 %v617_v2 }
  0x18   : > { %316 = vmatpush.bf16.msra.mxu0 %v616_v3  ;;  %629 = vmatpush.bf16.msra.mxu1 %v616_v3 }
  0x19   : > { %630 = vmatpush.bf16.msra.mxu2 %v616_v3  ;;  %631 = vmatpush.bf16.msra.mxu3 %v616_v3 }
  0x1c   : > { %317 = vmatpush.bf16.msra.mxu0 %v615_v4  ;;  %632 = vmatpush.bf16.msra.mxu1 %v615_v4 }
  0x1d   : > { %633 = vmatpush.bf16.msra.mxu2 %v615_v4  ;;  %634 = vmatpush.bf16.msra.mxu3 %v615_v4 }
  0x20   : > { %318 = vmatpush.bf16.msra.mxu0 %v614_v5  ;;  %635 = vmatpush.bf16.msra.mxu1 %v614_v5 }
  0x21   : > { %636 = vmatpush.bf16.msra.mxu2 %v614_v5  ;;  %637 = vmatpush.bf16.msra.mxu3 %v614_v5 }
  0x24   : > { %319 = vmatpush.bf16.msra.mxu0 %v613_v6  ;;  %638 = vmatpush.bf16.msra.mxu1 %v613_v6 }
  0x25   : > { %639 = vmatpush.bf16.msra.mxu2 %v613_v6  ;;  %640 = vmatpush.bf16.msra.mxu3 %v613_v6 }
  0x28   : > { %320 = vmatpush.bf16.msra.mxu0 %v612_v7  ;;  %641 = vmatpush.bf16.msra.mxu1 %v612_v7 }
  0x29   : > { %642 = vmatpush.bf16.msra.mxu2 %v612_v7  ;;  %643 = vmatpush.bf16.msra.mxu3 %v612_v7 }
  0x2b   : > { %321 = vmatmul.bf16.vlgmr.msra.gmra.mxu0 %v604_v8  ;;  %331 = vmatmul.bf16.vlgmr.msra.gmra.mxu1 %v606_v9 }
  0x2c   : > { %341 = vmatmul.bf16.vlgmr.msra.gmra.mxu2 %v608_v10  ;;  %351 = vmatmul.bf16.vlgmr.msra.gmra.mxu3 %v610_v11 }
  0x3b   : > { %326 = vmatmul.bf16.gmra.mxu0 %v605_v12  ;;  %336 = vmatmul.bf16.gmra.mxu1 %v607_v13 }
  0x3c   : > { %346 = vmatmul.bf16.gmra.mxu2 %v609_v14  ;;  %356 = vmatmul.bf16.gmra.mxu3 %v611_v15 }
  0xa8   : > { %v322_v16 = vpop.f32.mrf.mxu0  ;;  %v332_v17 = vpop.f32.mrf.mxu1 }
  0xa9   : > { %362 = vst [vmem:[%s725_s11] sm:$0xff] %v322_v16  ;;  %v399_v27 = vmul.f32 %v322_v16, %v322_v16  ;;  %v403_v39 = vmul.f32 %v332_v17, %v332_v17 }
  0xaa   : > { %366 = vst [vmem:[%s725_s11 + $0x20] sm:$0xff] %v332_v17 }
  0xaf   : > { %v342_v18 = vpop.f32.mrf.mxu2  ;;  %v352_v19 = vpop.f32.mrf.mxu3 }
  0xb0   : > { %v324_v20 = vpop.f32.mrf.mxu0  ;;  %v334_v21 = vpop.f32.mrf.mxu1  ;;  %370 = vst [vmem:[%s725_s11 + $0x40] sm:$0xff] %v342_v18  ;;  %v407_v53 = vmul.f32 %v342_v18, %v342_v18  ;;  %v411_v1 = vmul.f32 %v352_v19, %v352_v19 }
  0xb1   : > { %363 = vst [vmem:[%s725_s11 + $0x8] sm:$0xff] %v324_v20  ;;  %v400_v26 = vmul.f32 %v324_v20, %v324_v20  ;;  %v378_v28 = vadd.f32 %v324_v20, %v322_v16  ;;  %v404_v42 = vmul.f32 %v334_v21, %v334_v21 }
  0xb2   : > { %367 = vst [vmem:[%s725_s11 + $0x28] sm:$0xff] %v334_v21 }
  0xb3   : > { %374 = vst [vmem:[%s725_s11 + $0x60] sm:$0xff] %v352_v19  ;;  %v415_v30 = vadd.f32 %v400_v26, %v399_v27 }
  0xb7   : > { %v344_v22 = vpop.f32.mrf.mxu2  ;;  %v354_v23 = vpop.f32.mrf.mxu3 }
  0xb8   : > { %v327_v24 = vpop.f32.mrf.mxu0  ;;  %v337_v25 = vpop.f32.mrf.mxu1  ;;  %371 = vst [vmem:[%s725_s11 + $0x48] sm:$0xff] %v344_v22  ;;  %v408_v56 = vmul.f32 %v344_v22, %v344_v22  ;;  %v412_v4 = vmul.f32 %v354_v23, %v354_v23 }
  0xb9   : > { %364 = vst [vmem:[%s725_s11 + $0x10] sm:$0xff] %v327_v24  ;;  %v401_v29 = vmul.f32 %v327_v24, %v327_v24  ;;  %v379_v31 = vadd.f32 %v378_v28, %v327_v24  ;;  %v405_v45 = vmul.f32 %v337_v25, %v337_v25 }
  0xba   : > { %368 = vst [vmem:[%s725_s11 + $0x30] sm:$0xff] %v337_v25 }
  0xbb   : > { %375 = vst [vmem:[%s725_s11 + $0x68] sm:$0xff] %v354_v23  ;;  %v416_v36 = vadd.f32 %v415_v30, %v401_v29 }
  0xbf   : > { %v347_v32 = vpop.f32.mrf.mxu2  ;;  %v357_v33 = vpop.f32.mrf.mxu3 }
  0xc0   : > { %v329_v34 = vpop.f32.mrf.mxu0  ;;  %v339_v35 = vpop.f32.mrf.mxu1  ;;  %372 = vst [vmem:[%s725_s11 + $0x50] sm:$0xff] %v347_v32  ;;  %v409_v60 = vmul.f32 %v347_v32, %v347_v32  ;;  %v413_v8 = vmul.f32 %v357_v33, %v357_v33 }
  0xc1   : > { %365 = vst [vmem:[%s725_s11 + $0x18] sm:$0xff] %v329_v34  ;;  %v380_v37 = vadd.f32 %v379_v31, %v329_v34  ;;  %v402_v38 = vmul.f32 %v329_v34, %v329_v34  ;;  %v406_v51 = vmul.f32 %v339_v35, %v339_v35 }
  0xc2   : > { %369 = vst [vmem:[%s725_s11 + $0x38] sm:$0xff] %v339_v35 }
  0xc3   : > { %v381_v40 = vadd.f32 %v380_v37, %v332_v17  ;;  %v417_v41 = vadd.f32 %v416_v36, %v402_v38  ;;  %376 = vst [vmem:[%s725_s11 + $0x70] sm:$0xff] %v357_v33 }
  0xc5   : > { %v418_v43 = vadd.f32 %v417_v41, %v403_v39  ;;  %v382_v44 = vadd.f32 %v381_v40, %v334_v21 }
  0xc7   : > { %v383_v46 = vadd.f32 %v382_v44, %v337_v25  ;;  %v419_v47 = vadd.f32 %v418_v43, %v404_v42  ;;  %v349_v48 = vpop.f32.mrf.mxu2  ;;  %v359_v49 = vpop.f32.mrf.mxu3 }
  0xc8   : > { %373 = vst [vmem:[%s725_s11 + $0x58] sm:$0xff] %v349_v48  ;;  %v410_v0 = vmul.f32 %v349_v48, %v349_v48  ;;  %v414_v12 = vmul.f32 %v359_v49, %v359_v49 }
  0xc9   : > { %v384_v50 = vadd.f32 %v383_v46, %v339_v35  ;;  %v420_v52 = vadd.f32 %v419_v47, %v405_v45  ;;  %377 = vst [vmem:[%s725_s11 + $0x78] sm:$0xff] %v359_v49 }
  0xcb   : > { %v385_v54 = vadd.f32 %v384_v50, %v342_v18  ;;  %v421_v55 = vadd.f32 %v420_v52, %v406_v51 }
  0xcd   : > { %v422_v57 = vadd.f32 %v421_v55, %v407_v53  ;;  %v386_v58 = vadd.f32 %v385_v54, %v344_v22 }
  0xcf   : > { %v387_v59 = vadd.f32 %v386_v58, %v347_v32  ;;  %v423_v61 = vadd.f32 %v422_v57, %v408_v56 }
  0xd1   : > { %v424_v62 = vadd.f32 %v423_v61, %v409_v60  ;;  %v388_v63 = vadd.f32 %v387_v59, %v349_v48 }
  0xd3   : > { %v389_v2 = vadd.f32 %v388_v63, %v352_v19  ;;  %v425_v3 = vadd.f32 %v424_v62, %v410_v0 }
  0xd5   : > { %v426_v5 = vadd.f32 %v425_v3, %v411_v1  ;;  %v390_v6 = vadd.f32 %v389_v2, %v354_v23 }
  0xd7   : > { %v391_v7 = vadd.f32 %v390_v6, %v357_v33  ;;  %v427_v9 = vadd.f32 %v426_v5, %v412_v4 }
  0xd9   : > { %v428_v10 = vadd.f32 %v427_v9, %v413_v8  ;;  %v392_v11 = vadd.f32 %v391_v7, %v359_v49 }
  0xdb   : > { %v393_v13 = vrot.slane %v392_v11, 4  ;;  %v429_v14 = vadd.f32 %v428_v10, %v414_v12 }
  0xdd   : > { %v394_v15 = vadd.f32 %v393_v13, %v392_v11  ;;  %v430_v16 = vrot.slane %v429_v14, 4 }
  0xdf   : > { %v395_v17 = vrot.slane %v394_v15, 2  ;;  %v431_v18 = vadd.f32 %v430_v16, %v429_v14 }
  0xe1   : > { %v396_v19 = vadd.f32 %v395_v17, %v394_v15  ;;  %v432_v20 = vrot.slane %v431_v18, 2 }
  0xe3   : > { %v397_v21 = vrot.slane %v396_v19, 1  ;;  %v433_v22 = vadd.f32 %v432_v20, %v431_v18 }
  0xe5   : > { %v434_v23 = vrot.slane %v433_v22, 1  ;;  %v398_v24 = vadd.f32 %v397_v21, %v396_v19 }
  0xe7   : > { %v435_v25 = vadd.f32 %v434_v23, %v433_v22 }
  0xe9   : > { %v437_v26 = vsel %vm436_vm0, %v398_v24, %v435_v25 }
  0xea   : > { %v439_v27 = vsel %vm438_vm1, %v437_v26, 0.0 }
  0xeb   : > { %440 = vst [vmem:[%s184_s17] sm:$0xff] %v439_v27 }
  0xec PF: > { %s14_s12 = sadd.s32 1, %s658_s12  }
  0xed   : > { %p11_p5 = scmp.ge.s32.totalorder %s14_s12, 6  }
  0xef   :  { %13 = sbr.rel (!%p11_p5) target bundleno = 1 (0x1), region = 70 }

// kernel: resblock_forward.7
= control target key start
LH: loop header
LB: loop body
LE: loop exit
PB: predicated region body
PF: predicated region fallthrough
CT: control target
= control target key end

     0   :  { %s573_s21 = smov 0   ;;  %s736_s0 = inlined_call_operand.vmem [shape: f32[512,128], index: 0, kind: input, shape index: {}]   ;;  %s737_s1 = inlined_call_operand.vmem [shape: f32[512,128], index: 1, kind: input, shape index: {}]   ;;  %s738_s2 = inlined_call_operand.vmem [shape: f32[1,128], index: 2, kind: input, shape index: {}]   ;;  %s739_s3 = inlined_call_operand.vmem [shape: f32[1,128], index: 3, kind: input, shape index: {}]   ;;  %s740_s4 = inlined_call_operand.vmem [shape: f32[1,128], index: 4, kind: input, shape index: {}]   ;;  %s741_s5 = inlined_call_operand.vmem [shape: f32[1,128], index: 5, kind: input, shape index: {}]   ;;  %s742_s6 = inlined_call_operand.vmem [shape: f32[512,128], index: 6, kind: output, shape index: {}]  }
   0x1 LB: > { %s505_s22 = sadd.s32 4294967295, %s536_s21   ;;  %p509_p0 = scmp.ge.s32.totalorder %s536_s21, 1  ;;  %s536_s21 = sphi %s573_s21, %s16_s21  }
   0x2   : > { %p224_p1 = scmp.lt.s32.totalorder %s536_s21, 5 }
   0x4   : > { %p225_p2 = pnand %p509_p0, %p224_p1 }
   0x5   : > { %s510_s23 = sshll.u32 (!%p225_p2), %s505_s22, 4 }
   0x6   : > { %228 = sbr.rel (%p225_p2) target bundleno = 45 (0x2d), region = 44  ;;  %p260_p3 = scmp.lt.s32.totalorder (!%p225_p2), %s510_s23, 63 }
   0xb   : > { %s744_s23 = smov (!%p260_p3, %s510_s23), 63  ;;  %v584_v0 = vld [vmem:[%s738_s2] ss:$0 sm:$0xff] }
   0xc   : > { %v589_v1 = vld [vmem:[%s740_s4] ss:$0 sm:$0xff]  ;;  %s591_s28 = sshll.u32 %s744_s23, 3 }
   0xd   : > { %s597_s7 = scalar_lea.vmem %s736_s0, %s591_s28  ;;  %s603_s10 = scalar_lea.vmem %s737_s1, %s591_s28  ;;  %v608_v2 = vld [vmem:[%s739_s3] ss:$0 sm:$0xff] }
   0xe   : > { %v613_v3 = vld [vmem:[%s741_s5] ss:$0 sm:$0xff]  ;;  %v278_v6 = vld [vmem:[%s597_s7 + $0x8] sm:$0xff]  ;;  %v279_v11 = vld [vmem:[%s597_s7 + $0x10] sm:$0xff]  ;;  %s648_s17 = scalar_lea.vmem %s742_s6, %s591_s28 }
   0xf   : > { %v277_v4 = vld [vmem:[%s597_s7] sm:$0xff]  ;;  %v298_v9 = vmul.f32 %v584_v0, %v278_v6  ;;  %v334_v10 = vld [vmem:[%s603_s10 + $0x8] sm:$0xff]  ;;  %v335_v12 = vld [vmem:[%s603_s10 + $0x10] sm:$0xff]  ;;  %v299_v14 = vmul.f32 %v584_v0, %v279_v11 }
  0x10   : > { %v333_v5 = vld [vmem:[%s603_s10] sm:$0xff]  ;;  %v297_v7 = vmul.f32 %v584_v0, %v277_v4  ;;  %v354_v13 = vmul.f32 %v589_v1, %v334_v10  ;;  %v355_v15 = vmul.f32 %v589_v1, %v335_v12  ;;  %v280_v16 = vld [vmem:[%s597_s7 + $0x18] sm:$0xff]  ;;  %v282_v24 = vld [vmem:[%s597_s7 + $0x28] sm:$0xff] }
  0x11   : > { %v353_v8 = vmul.f32 %v589_v1, %v333_v5  ;;  %v336_v17 = vld [vmem:[%s603_s10 + $0x18] sm:$0xff]  ;;  %v281_v18 = vld [vmem:[%s597_s7 + $0x20] sm:$0xff]  ;;  %v318_v21 = vadd.f32 %v608_v2, %v298_v9  ;;  %v300_v22 = vmul.f32 %v584_v0, %v280_v16  ;;  %v319_v26 = vadd.f32 %v608_v2, %v299_v14  ;;  %v338_v29 = vld [vmem:[%s603_s10 + $0x28] sm:$0xff] }
  0x12   : > { %v317_v19 = vadd.f32 %v608_v2, %v297_v7  ;;  %v337_v23 = vld [vmem:[%s603_s10 + $0x20] sm:$0xff]  ;;  %v374_v25 = vadd.f32 %v613_v3, %v354_v13  ;;  %v375_v27 = vadd.f32 %v613_v3, %v355_v15  ;;  %v356_v28 = vmul.f32 %v589_v1, %v336_v17  ;;  %v283_v38 = vld [vmem:[%s597_s7 + $0x30] sm:$0xff]  ;;  %v284_v44 = vld [vmem:[%s597_s7 + $0x38] sm:$0xff] }
  0x13   : > { %v373_v20 = vadd.f32 %v613_v3, %v353_v8  ;;  %v320_v31 = vadd.f32 %v608_v2, %v300_v22  ;;  %v301_v32 = vmul.f32 %v584_v0, %v281_v18  ;;  %v357_v33 = vmul.f32 %v589_v1, %v337_v23  ;;  %v339_v39 = vld [vmem:[%s603_s10 + $0x30] sm:$0xff]  ;;  %v340_v45 = vld [vmem:[%s603_s10 + $0x38] sm:$0xff]  ;;  %v285_v46 = vld [vmem:[%s597_s7 + $0x40] sm:$0xff] }
  0x14   : > { %v390_v34 = vadd.f32 %v374_v25, %v318_v21  ;;  %v391_v35 = vadd.f32 %v375_v27, %v319_v26  ;;  %v376_v36 = vadd.f32 %v613_v3, %v356_v28  ;;  %v302_v37 = vmul.f32 %v584_v0, %v282_v24  ;;  %v341_v55 = vld [vmem:[%s603_s10 + $0x40] sm:$0xff]  ;;  %v286_v60 = vld [vmem:[%s597_s7 + $0x48] sm:$0xff]  ;;  %v287_v6 = vld [vmem:[%s597_s7 + $0x50] sm:$0xff] }
  0x15   : > { %v389_v30 = vadd.f32 %v373_v20, %v317_v19  ;;  %v321_v41 = vadd.f32 %v608_v2, %v301_v32  ;;  %v377_v42 = vadd.f32 %v613_v3, %v357_v33  ;;  %v358_v43 = vmul.f32 %v589_v1, %v338_v29  ;;  %v342_v61 = vld [vmem:[%s603_s10 + $0x48] sm:$0xff]  ;;  %v343_v7 = vld [vmem:[%s603_s10 + $0x50] sm:$0xff]  ;;  %v288_v12 = vld [vmem:[%s597_s7 + $0x58] sm:$0xff] }
  0x16   : > { %v406_v47 = vmax.f32 %v390_v34, 0.0  ;;  %v407_v48 = vmax.f32 %v391_v35, 0.0  ;;  %v392_v49 = vadd.f32 %v376_v36, %v320_v31  ;;  %v322_v50 = vadd.f32 %v608_v2, %v302_v37  ;;  %v344_v21 = vld [vmem:[%s603_s10 + $0x58] sm:$0xff]  ;;  %v289_v22 = vld [vmem:[%s597_s7 + $0x60] sm:$0xff]  ;;  %v290_v28 = vld [vmem:[%s597_s7 + $0x68] sm:$0xff] }
  0x17   : > { %v405_v40 = vmax.f32 %v389_v30, 0.0  ;;  %v393_v51 = vadd.f32 %v377_v42, %v321_v41  ;;  %v378_v52 = vadd.f32 %v613_v3, %v358_v43  ;;  %v303_v53 = vmul.f32 %v584_v0, %v283_v38  ;;  %v345_v27 = vld [vmem:[%s603_s10 + $0x60] sm:$0xff]  ;;  %v346_v33 = vld [vmem:[%s603_s10 + $0x68] sm:$0xff]  ;;  %v291_v38 = vld [vmem:[%s597_s7 + $0x70] sm:$0xff] }
  0x18   : > { %v359_v54 = vmul.f32 %v589_v1, %v339_v39  ;;  %422 = vst [vmem:[%s648_s17 + $0x8] sm:$0xff] %v406_v47  ;;  %v408_v56 = vmax.f32 %v392_v49, 0.0  ;;  %v304_v57 = vmul.f32 %v584_v0, %v284_v44  ;;  %v360_v58 = vmul.f32 %v589_v1, %v340_v45  ;;  %v347_v43 = vld [vmem:[%s603_s10 + $0x70] sm:$0xff]  ;;  %v292_v44 = vld [vmem:[%s597_s7 + $0x78] sm:$0xff] }
  0x19   : > { %421 = vst [vmem:[%s648_s17] sm:$0xff] %v405_v40  ;;  %v305_v59 = vmul.f32 %v584_v0, %v285_v46  ;;  %v409_v62 = vmax.f32 %v393_v51, 0.0  ;;  %v394_v63 = vadd.f32 %v378_v52, %v322_v50  ;;  %v323_v4 = vadd.f32 %v608_v2, %v303_v53  ;;  %v348_v49 = vld [vmem:[%s603_s10 + $0x78] sm:$0xff] }
  0x1a   : > { %423 = vst [vmem:[%s648_s17 + $0x10] sm:$0xff] %v407_v48  ;;  %v379_v5 = vadd.f32 %v613_v3, %v359_v54  ;;  %v324_v8 = vadd.f32 %v608_v2, %v304_v57  ;;  %v380_v9 = vadd.f32 %v613_v3, %v360_v58  ;;  %v361_v11 = vmul.f32 %v589_v1, %v341_v55 }
  0x1b   : > { %424 = vst [vmem:[%s648_s17 + $0x18] sm:$0xff] %v408_v56  ;;  %v325_v10 = vadd.f32 %v608_v2, %v305_v59  ;;  %v410_v13 = vmax.f32 %v394_v63, 0.0  ;;  %v306_v15 = vmul.f32 %v584_v0, %v286_v60  ;;  %v362_v16 = vmul.f32 %v589_v1, %v342_v61 }
  0x1c   : > { %425 = vst [vmem:[%s648_s17 + $0x20] sm:$0xff] %v409_v62  ;;  %v395_v14 = vadd.f32 %v379_v5, %v323_v4  ;;  %v396_v17 = vadd.f32 %v380_v9, %v324_v8  ;;  %v381_v18 = vadd.f32 %v613_v3, %v361_v11  ;;  %v307_v19 = vmul.f32 %v584_v0, %v287_v6 }
  0x1d   : > { %v363_v20 = vmul.f32 %v589_v1, %v343_v7  ;;  %426 = vst [vmem:[%s648_s17 + $0x28] sm:$0xff] %v410_v13  ;;  %v326_v24 = vadd.f32 %v608_v2, %v306_v15  ;;  %v382_v25 = vadd.f32 %v613_v3, %v362_v16  ;;  %v308_v26 = vmul.f32 %v584_v0, %v288_v12 }
  0x1e   : > { %v411_v23 = vmax.f32 %v395_v14, 0.0  ;;  %v412_v29 = vmax.f32 %v396_v17, 0.0  ;;  %v397_v30 = vadd.f32 %v381_v18, %v325_v10  ;;  %v327_v31 = vadd.f32 %v608_v2, %v307_v19 }
  0x1f   : > { %v383_v32 = vadd.f32 %v613_v3, %v363_v20  ;;  %v398_v34 = vadd.f32 %v382_v25, %v326_v24  ;;  %v328_v35 = vadd.f32 %v608_v2, %v308_v26  ;;  %v364_v36 = vmul.f32 %v589_v1, %v344_v21 }
  0x20   : > { %427 = vst [vmem:[%s648_s17 + $0x30] sm:$0xff] %v411_v23  ;;  %v309_v37 = vmul.f32 %v584_v0, %v289_v22  ;;  %v413_v39 = vmax.f32 %v397_v30, 0.0  ;;  %v365_v41 = vmul.f32 %v589_v1, %v345_v27  ;;  %v310_v42 = vmul.f32 %v584_v0, %v290_v28 }
  0x21   : > { %428 = vst [vmem:[%s648_s17 + $0x38] sm:$0xff] %v412_v29  ;;  %v399_v40 = vadd.f32 %v383_v32, %v327_v31  ;;  %v414_v45 = vmax.f32 %v398_v34, 0.0  ;;  %v384_v46 = vadd.f32 %v613_v3, %v364_v36  ;;  %v366_v48 = vmul.f32 %v589_v1, %v346_v33 }
  0x22   : > { %v329_v47 = vadd.f32 %v608_v2, %v309_v37  ;;  %429 = vst [vmem:[%s648_s17 + $0x40] sm:$0xff] %v413_v39  ;;  %v385_v51 = vadd.f32 %v613_v3, %v365_v41  ;;  %v330_v52 = vadd.f32 %v608_v2, %v310_v42  ;;  %v311_v53 = vmul.f32 %v584_v0, %v291_v38 }
  0x23   : > { %v415_v50 = vmax.f32 %v399_v40, 0.0  ;;  %430 = vst [vmem:[%s648_s17 + $0x48] sm:$0xff] %v414_v45  ;;  %v400_v54 = vadd.f32 %v384_v46, %v328_v35  ;;  %v386_v55 = vadd.f32 %v613_v3, %v366_v48  ;;  %v367_v56 = vmul.f32 %v589_v1, %v347_v43 }
  0x24   : > { %v312_v57 = vmul.f32 %v584_v0, %v292_v44  ;;  %v401_v58 = vadd.f32 %v385_v51, %v329_v47  ;;  %v331_v59 = vadd.f32 %v608_v2, %v311_v53  ;;  %v368_v60 = vmul.f32 %v589_v1, %v348_v49 }
  0x25   : > { %431 = vst [vmem:[%s648_s17 + $0x50] sm:$0xff] %v415_v50  ;;  %v416_v61 = vmax.f32 %v400_v54, 0.0  ;;  %v402_v62 = vadd.f32 %v386_v55, %v330_v52  ;;  %v387_v63 = vadd.f32 %v613_v3, %v367_v56 }
  0x26   : > { %v332_v4 = vadd.f32 %v608_v2, %v312_v57  ;;  %v417_v5 = vmax.f32 %v401_v58, 0.0  ;;  %v388_v6 = vadd.f32 %v613_v3, %v368_v60 }
  0x27   : > { %432 = vst [vmem:[%s648_s17 + $0x58] sm:$0xff] %v416_v61  ;;  %v418_v0 = vmax.f32 %v402_v62, 0.0  ;;  %v403_v7 = vadd.f32 %v387_v63, %v331_v59 }
  0x28   : > { %433 = vst [vmem:[%s648_s17 + $0x60] sm:$0xff] %v417_v5  ;;  %v404_v8 = vadd.f32 %v388_v6, %v332_v4 }
  0x29   : > { %434 = vst [vmem:[%s648_s17 + $0x68] sm:$0xff] %v418_v0  ;;  %v419_v9 = vmax.f32 %v403_v7, 0.0 }
  0x2a   : > { %v420_v10 = vmax.f32 %v404_v8, 0.0 }
  0x2b   : > { %435 = vst [vmem:[%s648_s17 + $0x70] sm:$0xff] %v419_v9 }
  0x2c   : > { %436 = vst [vmem:[%s648_s17 + $0x78] sm:$0xff] %v420_v10 }
  0x2d PF: > { %s16_s21 = sadd.s32 1, %s536_s21  }
  0x2e   : > { %p13_p4 = scmp.ge.s32.totalorder %s16_s21, 6  }
  0x30   :  { %15 = sbr.rel (!%p13_p4) target bundleno = 1 (0x1), region = 77 }

</bundles_post_ra>
